<compile_context>
chip_gen: v7x
topology: tpu7x:2x2x1
jax: 0.10.0
libtpu: 0.0.40
codegen_flags: <defaults>
</compile_context>

<pallas_src>
import jax
import jax.numpy as jnp
from jax import lax
from jax.experimental import pallas as pl
from jax.experimental.pallas import tpu as pltpu

# MXU operand dtype (accumulation is always f32). bf16 is MXU-native on
# v6e/v7x; set to jnp.float32 if full precision is required.
COMPUTE_DTYPE = jnp.bfloat16
SUBLANE = 8


# ----------------------------- Pallas kernel -------------------------------

def _rnn_lm_kernel(tok_ref, emb_ref, wih_ref, whh_ref, b_ref,
                   wout_ref, bout_ref, h0_ref, c0_ref,
                   logits_ref, hcn_ref):
    L, Bp, H = h0_ref.shape
    TB = tok_ref.shape[0]
    T = TB // Bp
    V = emb_ref.shape[0]

    def sigmoid(x):
        # sigmoid(x) == 0.5 * tanh(x/2) + 0.5: one EUP op, no VPU divide on
        # the recurrence critical path.
        return 0.5 * jnp.tanh(0.5 * x) + 0.5

    # ---- Embedding lookup as one-hot @ table (exact, feeds the MXU) --------
    tok = tok_ref[...]                                          # (TB, 1) int32
    lane = lax.broadcasted_iota(jnp.int32, (TB, V), 1)
    onehot = jnp.where(tok == lane, 1.0, 0.0).astype(emb_ref.dtype)
    x = jnp.dot(onehot, emb_ref[...],
                preferred_element_type=jnp.float32)             # (TB, H) f32

    # TODO(synk): rnn_dropout / hidden_dropout are eval-mode (identity) here.

    for l in range(L):                         # static, unrolled layer loop
        wih = wih_ref[l]                                        # (H, 4H) bf16
        whh = whh_ref[l]                                        # (H, 4H) bf16

        # Input->gate matmul hoisted out of the sequential time loop; bias
        # folded in; kept in registers (only ~8 vregs), no VMEM round-trip.
        gx = (jnp.dot(x.astype(wih.dtype), wih,
                      preferred_element_type=jnp.float32)
              + b_ref[l])                                       # (TB, 4H) f32

        h = h0_ref[l]                                           # (Bp, H) f32
        c = c0_ref[l]
        outs = []
        for t in range(T):                     # static, unrolled time loop
            gates = gx[t * Bp:(t + 1) * Bp, :] + jnp.dot(
                h.astype(whh.dtype), whh,
                preferred_element_type=jnp.float32)             # (Bp, 4H)
            # Gate layout is (i, f, o | g): one sigmoid over the contiguous
            # 3H slice, one tanh over the trailing H slice.
            s = sigmoid(gates[:, :3 * H])
            g = jnp.tanh(gates[:, 3 * H:])
            i = s[:, 0 * H:1 * H]
            f = s[:, 1 * H:2 * H]
            o = s[:, 2 * H:3 * H]
            c = f * c + i * g
            h = o * jnp.tanh(c)
            outs.append(h)
        # One bulk, lane/sublane-aligned layer output (no per-step stores).
        x = jnp.concatenate(outs, axis=0)                       # (TB, H) f32
        hcn_ref[l] = h
        hcn_ref[L + l] = c

    # ---- output head: linear_proj = identity (tie_embed=False) -------------
    # logits are lane-dense: last dim = vocab = 128.
    logits_ref[...] = (jnp.dot(x.astype(wout_ref.dtype), wout_ref[...],
                               preferred_element_type=jnp.float32)
                       + bout_ref[...]).astype(logits_ref.dtype)


# ------------------------------ JAX wrapper --------------------------------

def rnn_lm_forward(tokens, hidden, params):
    """tokens: (T, B) int32; hidden: (h0, c0), each (L, B, H).
    Returns (logits (T, B, V), (hn, cn))."""
    h0, c0 = hidden
    T, B = tokens.shape
    L, _, H = h0.shape
    V, E = params["embedding"].shape
    assert E == H, "this kernel instance packs layers assuming embed == hidden"

    # Pad batch to a full sublane group so every per-step (Bp, .) slice is
    # sublane-aligned and unmasked. Padded token id 0 and zero h0/c0 stay
    # finite; padded rows are sliced away below.
    Bp = max(SUBLANE, ((B + SUBLANE - 1) // SUBLANE) * SUBLANE)
    pad = Bp - B
    tok_p = jnp.pad(tokens.astype(jnp.int32), ((0, 0), (0, pad)))
    h0_p = jnp.pad(h0, ((0, 0), (0, pad), (0, 0)))
    c0_p = jnp.pad(c0, ((0, 0), (0, pad), (0, 0)))

    tok2d = tok_p.reshape(T * Bp, 1)
    cd = COMPUTE_DTYPE
    # Host-side bf16 weight casts (halves weight DMA bytes, no in-kernel cast).
    args = (tok2d,
            params["embedding"].astype(cd),
            params["w_ih"].astype(cd),
            params["w_hh"].astype(cd),
            params["b"],
            params["w_out"].astype(cd),
            params["b_out"],
            h0_p, c0_p)

    # Advisory cost estimate (the whole forward is tiny / dispatch-dominated).
    flops = (2 * T * Bp * V * E                  # embedding one-hot matmul
             + L * 2 * T * Bp * H * 4 * H        # hoisted input->gate matmuls
             + L * T * 2 * Bp * H * 4 * H        # recurrent h @ W_hh matmuls
             + 2 * T * Bp * H * V)               # output projection
    transcendentals = L * T * Bp * H * 5         # 3 sigmoid + 2 tanh per unit
    bytes_accessed = sum(int(a.size) * a.dtype.itemsize for a in args)
    bytes_accessed += (T * Bp * V + 2 * L * Bp * H) * 4

    vmem = pl.BlockSpec(memory_space=pltpu.MemorySpace.VMEM)
    logits, hcn = pl.pallas_call(
        _rnn_lm_kernel,
        out_shape=(
            jax.ShapeDtypeStruct((T * Bp, V), jnp.float32),   # logits (flat)
            jax.ShapeDtypeStruct((2 * L, Bp, H), jnp.float32),  # [h_n ; c_n]
        ),
        in_specs=[vmem] * len(args),
        out_specs=(vmem, vmem),
        cost_estimate=pl.CostEstimate(
            flops=flops, transcendentals=transcendentals,
            bytes_accessed=bytes_accessed),
    )(*args)

    logits = logits.reshape(T, Bp, V)[:, :B, :]
    hn = hcn[:L, :B, :]
    cn = hcn[L:, :B, :]
    return logits, (hn, cn)


# ------------------------- deterministic param init ------------------------
# Gate-column convention here is (i, f, o, g). If importing real PyTorch LSTM
# weights (packed i, f, g, o), permute the column blocks host-side.

def init_params(key, vocab_size, embed_size, hidden_size, num_layers):
    assert embed_size == hidden_size
    ks = jax.random.split(key, 3 + 4 * num_layers)
    emb = jax.random.normal(ks[0], (vocab_size, embed_size), jnp.float32)
    bound = 1.0 / float(hidden_size) ** 0.5      # PyTorch LSTM/Linear default
    w_ih, w_hh, b = [], [], []
    for l in range(num_layers):
        k0, k1, k2, k3 = ks[3 + 4 * l: 3 + 4 * l + 4]
        w_ih.append(jax.random.uniform(k0, (embed_size, 4 * hidden_size),
                                       jnp.float32, -bound, bound))
        w_hh.append(jax.random.uniform(k1, (hidden_size, 4 * hidden_size),
                                       jnp.float32, -bound, bound))
        b_ih = jax.random.uniform(k2, (1, 4 * hidden_size), jnp.float32,
                                  -bound, bound)
        b_hh = jax.random.uniform(k3, (1, 4 * hidden_size), jnp.float32,
                                  -bound, bound)
        b.append(b_ih + b_hh)            # fold the two LSTM biases at init
    w_out = jax.random.uniform(ks[1], (hidden_size, vocab_size), jnp.float32,
                               -bound, bound)
    b_out = jax.random.uniform(ks[2], (1, vocab_size), jnp.float32,
                               -bound, bound)
    return dict(embedding=emb,
                w_ih=jnp.stack(w_ih), w_hh=jnp.stack(w_hh), b=jnp.stack(b),
                w_out=w_out, b_out=b_out)


# ----------------------------- pure-JAX reference ---------------------------

def ref_forward(tokens, hidden, params):
    h0, c0 = hidden
    T, B = tokens.shape
    L, _, H = h0.shape
    cd = COMPUTE_DTYPE

    def sigmoid(x):
        return 1.0 / (1.0 + jnp.exp(-x))

    # embedding as seen through the bf16 one-hot matmul (== bf16-rounded table)
    emb_tbl = params["embedding"].astype(cd).astype(jnp.float32)
    x = emb_tbl[tokens.reshape(-1)]                          # (T*B, H)
    hn, cn = [], []
    for l in range(L):
        w_ih = params["w_ih"][l].astype(cd)
        w_hh = params["w_hh"][l].astype(cd)
        gx = jnp.dot(x.astype(cd), w_ih,
                     preferred_element_type=jnp.float32) + params["b"][l]
        h, c = h0[l], c0[l]
        outs = []
        for t in range(T):
            gates = gx[t * B:(t + 1) * B] + jnp.dot(
                h.astype(cd), w_hh, preferred_element_type=jnp.float32)
            # gate layout (i, f, o, g)
            i = sigmoid(gates[:, 0:H])
            f = sigmoid(gates[:, H:2 * H])
            o = sigmoid(gates[:, 2 * H:3 * H])
            g = jnp.tanh(gates[:, 3 * H:4 * H])
            c = f * c + i * g
            h = o * jnp.tanh(c)
            outs.append(h)
        x = jnp.concatenate(outs, axis=0)                    # (T*B, H)
        hn.append(h)
        cn.append(c)
    logits = (jnp.dot(x.astype(cd), params["w_out"].astype(cd),
                      preferred_element_type=jnp.float32) + params["b_out"])
    return logits.reshape(T, B, -1), (jnp.stack(hn), jnp.stack(cn))


# --------------------------------- main -------------------------------------

if __name__ == "__main__":
    VOCAB, EMBED, HIDDEN, LAYERS = 128, 32, 32, 2
    T, B = 8, 2

    key = jax.random.PRNGKey(0)
    k_tok, k_par = jax.random.split(key)
    tokens = jax.random.randint(k_tok, (T, B), 0, VOCAB, jnp.int32)
    params = init_params(k_par, VOCAB, EMBED, HIDDEN, LAYERS)

    # init_hidden(batch): zeros; lstm -> (h0, c0)
    h0 = jnp.zeros((LAYERS, B, HIDDEN), jnp.float32)
    c0 = jnp.zeros((LAYERS, B, HIDDEN), jnp.float32)

    # TODO(synk): cell_type='rnn'/'gru' and tie_embed=True (+linear_proj)
    # variants of RNN_LM are not implemented; this kernel is the
    # lstm / tie_embed=False / eval-mode-dropout instance.
    logits, (hn, cn) = rnn_lm_forward(tokens, (h0, c0), params)
    jax.block_until_ready(logits)

    ref_logits, (ref_hn, ref_cn) = ref_forward(tokens, (h0, c0), params)

    assert logits.shape == (T, B, VOCAB)
    assert hn.shape == (LAYERS, B, HIDDEN) and cn.shape == (LAYERS, B, HIDDEN)
    assert jnp.allclose(logits, ref_logits, atol=3e-3, rtol=3e-3), \
        float(jnp.max(jnp.abs(logits - ref_logits)))
    assert jnp.allclose(hn, ref_hn, atol=3e-3, rtol=3e-3)
    assert jnp.allclose(cn, ref_cn, atol=3e-3, rtol=3e-3)
    print("KERNEL_OK")
</pallas_src>

<mosaic_0001>
module attributes {stable_mosaic.version = 11 : i64} {
  func.func @_rnn_lm_kernel(%arg0: memref<64x1xi32, #tpu.memory_space<vmem>>, %arg1: memref<128x32xbf16, #tpu.memory_space<vmem>>, %arg2: memref<2x32x128xbf16, #tpu.memory_space<vmem>>, %arg3: memref<2x32x128xbf16, #tpu.memory_space<vmem>>, %arg4: memref<2x1x128xf32, #tpu.memory_space<vmem>>, %arg5: memref<32x128xbf16, #tpu.memory_space<vmem>>, %arg6: memref<1x128xf32, #tpu.memory_space<vmem>>, %arg7: memref<2x8x32xf32, #tpu.memory_space<vmem>>, %arg8: memref<2x8x32xf32, #tpu.memory_space<vmem>>, %arg9: memref<64x128xf32, #tpu.memory_space<vmem>>, %arg10: memref<4x8x32xf32, #tpu.memory_space<vmem>>) attributes {dimension_semantics = [], scalar_prefetch = 0 : i64, scratch_operands = 0 : i64, tpu.core_type = #tpu.core_type<tc>} {
    %c0 = arith.constant 0 : index
    %c0_0 = arith.constant 0 : index
    %0 = vector.load %arg0[%c0, %c0_0] : memref<64x1xi32, #tpu.memory_space<vmem>>, vector<64x1xi32>
    %1 = tpu.iota {dimensions = array<i32: 1>} : vector<64x128xi32>
    %2 = vector.broadcast %0 : vector<64x1xi32> to vector<64x128xi32>
    %3 = arith.cmpi eq, %2, %1 : vector<64x128xi32>
    %cst = arith.constant 1.000000e+00 : f32
    %cst_1 = arith.constant 0.000000e+00 : f32
    %4 = vector.broadcast %cst : f32 to vector<64x128xf32>
    %5 = vector.broadcast %cst_1 : f32 to vector<64x128xf32>
    %6 = arith.select %3, %4, %5 : vector<64x128xi1>, vector<64x128xf32>
    %7 = arith.truncf %6 : vector<64x128xf32> to vector<64x128xbf16>
    %c0_2 = arith.constant 0 : index
    %c0_3 = arith.constant 0 : index
    %8 = vector.load %arg1[%c0_2, %c0_3] : memref<128x32xbf16, #tpu.memory_space<vmem>>, vector<128x32xbf16>
    %cst_4 = arith.constant dense<0.000000e+00> : vector<64x32xf32>
    %9 = tpu.matmul %7, %8, %cst_4 {dimension_numbers = #tpu.dot_dimension_numbers<[1], [0], [0], [1], [0, 0, 1, 1], [], []>} : vector<64x128xbf16>, vector<128x32xbf16>, vector<64x32xf32> -> vector<64x32xf32>
    %c0_5 = arith.constant 0 : index
    %c0_6 = arith.constant 0 : index
    %c0_7 = arith.constant 0 : index
    %10 = vector.load %arg2[%c0_5, %c0_6, %c0_7] : memref<2x32x128xbf16, #tpu.memory_space<vmem>>, vector<1x32x128xbf16>
    %11 = vector.shape_cast %10 : vector<1x32x128xbf16> to vector<32x128xbf16>
    %c0_8 = arith.constant 0 : index
    %c0_9 = arith.constant 0 : index
    %c0_10 = arith.constant 0 : index
    %12 = vector.load %arg3[%c0_8, %c0_9, %c0_10] : memref<2x32x128xbf16, #tpu.memory_space<vmem>>, vector<1x32x128xbf16>
    %13 = vector.shape_cast %12 : vector<1x32x128xbf16> to vector<32x128xbf16>
    %14 = arith.truncf %9 : vector<64x32xf32> to vector<64x32xbf16>
    %cst_11 = arith.constant dense<0.000000e+00> : vector<64x128xf32>
    %15 = tpu.matmul %14, %11, %cst_11 {dimension_numbers = #tpu.dot_dimension_numbers<[1], [0], [0], [1], [0, 0, 1, 1], [], []>} : vector<64x32xbf16>, vector<32x128xbf16>, vector<64x128xf32> -> vector<64x128xf32>
    %c0_12 = arith.constant 0 : index
    %c0_13 = arith.constant 0 : index
    %c0_14 = arith.constant 0 : index
    %16 = vector.load %arg4[%c0_12, %c0_13, %c0_14] : memref<2x1x128xf32, #tpu.memory_space<vmem>>, vector<1x1x128xf32>
    %17 = vector.shape_cast %16 : vector<1x1x128xf32> to vector<1x128xf32>
    %18 = vector.broadcast %17 : vector<1x128xf32> to vector<64x128xf32>
    %19 = arith.addf %15, %18 : vector<64x128xf32>
    %c0_15 = arith.constant 0 : index
    %c0_16 = arith.constant 0 : index
    %c0_17 = arith.constant 0 : index
    %20 = vector.load %arg7[%c0_15, %c0_16, %c0_17] : memref<2x8x32xf32, #tpu.memory_space<vmem>>, vector<1x8x32xf32>
    %21 = vector.shape_cast %20 : vector<1x8x32xf32> to vector<8x32xf32>
    %c0_18 = arith.constant 0 : index
    %c0_19 = arith.constant 0 : index
    %c0_20 = arith.constant 0 : index
    %22 = vector.load %arg8[%c0_18, %c0_19, %c0_20] : memref<2x8x32xf32, #tpu.memory_space<vmem>>, vector<1x8x32xf32>
    %23 = vector.shape_cast %22 : vector<1x8x32xf32> to vector<8x32xf32>
    %24 = vector.extract_strided_slice %19 {offsets = [0, 0], sizes = [8, 128], strides = [1, 1]} : vector<64x128xf32> to vector<8x128xf32>
    %25 = arith.truncf %21 : vector<8x32xf32> to vector<8x32xbf16>
    %cst_21 = arith.constant dense<0.000000e+00> : vector<8x128xf32>
    %26 = tpu.matmul %25, %13, %cst_21 {dimension_numbers = #tpu.dot_dimension_numbers<[1], [0], [0], [1], [0, 0, 1, 1], [], []>} : vector<8x32xbf16>, vector<32x128xbf16>, vector<8x128xf32> -> vector<8x128xf32>
    %27 = arith.addf %24, %26 : vector<8x128xf32>
    %28 = vector.extract_strided_slice %27 {offsets = [0, 0], sizes = [8, 96], strides = [1, 1]} : vector<8x128xf32> to vector<8x96xf32>
    %cst_22 = arith.constant 5.000000e-01 : f32
    %29 = vector.broadcast %cst_22 : f32 to vector<8x96xf32>
    %30 = arith.mulf %29, %28 : vector<8x96xf32>
    %31 = math.tanh %30 : vector<8x96xf32>
    %cst_23 = arith.constant 5.000000e-01 : f32
    %32 = vector.broadcast %cst_23 : f32 to vector<8x96xf32>
    %33 = arith.mulf %32, %31 : vector<8x96xf32>
    %cst_24 = arith.constant 5.000000e-01 : f32
    %34 = vector.broadcast %cst_24 : f32 to vector<8x96xf32>
    %35 = arith.addf %33, %34 : vector<8x96xf32>
    %36 = vector.extract_strided_slice %27 {offsets = [0, 96], sizes = [8, 32], strides = [1, 1]} : vector<8x128xf32> to vector<8x32xf32>
    %37 = math.tanh %36 : vector<8x32xf32>
    %38 = vector.extract_strided_slice %35 {offsets = [0, 0], sizes = [8, 32], strides = [1, 1]} : vector<8x96xf32> to vector<8x32xf32>
    %39 = vector.extract_strided_slice %35 {offsets = [0, 32], sizes = [8, 32], strides = [1, 1]} : vector<8x96xf32> to vector<8x32xf32>
    %40 = vector.extract_strided_slice %35 {offsets = [0, 64], sizes = [8, 32], strides = [1, 1]} : vector<8x96xf32> to vector<8x32xf32>
    %41 = arith.mulf %39, %23 : vector<8x32xf32>
    %42 = arith.mulf %38, %37 : vector<8x32xf32>
    %43 = arith.addf %41, %42 : vector<8x32xf32>
    %44 = math.tanh %43 : vector<8x32xf32>
    %45 = arith.mulf %40, %44 : vector<8x32xf32>
    %46 = vector.extract_strided_slice %19 {offsets = [8, 0], sizes = [8, 128], strides = [1, 1]} : vector<64x128xf32> to vector<8x128xf32>
    %47 = arith.truncf %45 : vector<8x32xf32> to vector<8x32xbf16>
    %cst_25 = arith.constant dense<0.000000e+00> : vector<8x128xf32>
    %48 = tpu.matmul %47, %13, %cst_25 {dimension_numbers = #tpu.dot_dimension_numbers<[1], [0], [0], [1], [0, 0, 1, 1], [], []>} : vector<8x32xbf16>, vector<32x128xbf16>, vector<8x128xf32> -> vector<8x128xf32>
    %49 = arith.addf %46, %48 : vector<8x128xf32>
    %50 = vector.extract_strided_slice %49 {offsets = [0, 0], sizes = [8, 96], strides = [1, 1]} : vector<8x128xf32> to vector<8x96xf32>
    %cst_26 = arith.constant 5.000000e-01 : f32
    %51 = vector.broadcast %cst_26 : f32 to vector<8x96xf32>
    %52 = arith.mulf %51, %50 : vector<8x96xf32>
    %53 = math.tanh %52 : vector<8x96xf32>
    %cst_27 = arith.constant 5.000000e-01 : f32
    %54 = vector.broadcast %cst_27 : f32 to vector<8x96xf32>
    %55 = arith.mulf %54, %53 : vector<8x96xf32>
    %cst_28 = arith.constant 5.000000e-01 : f32
    %56 = vector.broadcast %cst_28 : f32 to vector<8x96xf32>
    %57 = arith.addf %55, %56 : vector<8x96xf32>
    %58 = vector.extract_strided_slice %49 {offsets = [0, 96], sizes = [8, 32], strides = [1, 1]} : vector<8x128xf32> to vector<8x32xf32>
    %59 = math.tanh %58 : vector<8x32xf32>
    %60 = vector.extract_strided_slice %57 {offsets = [0, 0], sizes = [8, 32], strides = [1, 1]} : vector<8x96xf32> to vector<8x32xf32>
    %61 = vector.extract_strided_slice %57 {offsets = [0, 32], sizes = [8, 32], strides = [1, 1]} : vector<8x96xf32> to vector<8x32xf32>
    %62 = vector.extract_strided_slice %57 {offsets = [0, 64], sizes = [8, 32], strides = [1, 1]} : vector<8x96xf32> to vector<8x32xf32>
    %63 = arith.mulf %61, %43 : vector<8x32xf32>
    %64 = arith.mulf %60, %59 : vector<8x32xf32>
    %65 = arith.addf %63, %64 : vector<8x32xf32>
    %66 = math.tanh %65 : vector<8x32xf32>
    %67 = arith.mulf %62, %66 : vector<8x32xf32>
    %68 = vector.extract_strided_slice %19 {offsets = [16, 0], sizes = [8, 128], strides = [1, 1]} : vector<64x128xf32> to vector<8x128xf32>
    %69 = arith.truncf %67 : vector<8x32xf32> to vector<8x32xbf16>
    %cst_29 = arith.constant dense<0.000000e+00> : vector<8x128xf32>
    %70 = tpu.matmul %69, %13, %cst_29 {dimension_numbers = #tpu.dot_dimension_numbers<[1], [0], [0], [1], [0, 0, 1, 1], [], []>} : vector<8x32xbf16>, vector<32x128xbf16>, vector<8x128xf32> -> vector<8x128xf32>
    %71 = arith.addf %68, %70 : vector<8x128xf32>
    %72 = vector.extract_strided_slice %71 {offsets = [0, 0], sizes = [8, 96], strides = [1, 1]} : vector<8x128xf32> to vector<8x96xf32>
    %cst_30 = arith.constant 5.000000e-01 : f32
    %73 = vector.broadcast %cst_30 : f32 to vector<8x96xf32>
    %74 = arith.mulf %73, %72 : vector<8x96xf32>
    %75 = math.tanh %74 : vector<8x96xf32>
    %cst_31 = arith.constant 5.000000e-01 : f32
    %76 = vector.broadcast %cst_31 : f32 to vector<8x96xf32>
    %77 = arith.mulf %76, %75 : vector<8x96xf32>
    %cst_32 = arith.constant 5.000000e-01 : f32
    %78 = vector.broadcast %cst_32 : f32 to vector<8x96xf32>
    %79 = arith.addf %77, %78 : vector<8x96xf32>
    %80 = vector.extract_strided_slice %71 {offsets = [0, 96], sizes = [8, 32], strides = [1, 1]} : vector<8x128xf32> to vector<8x32xf32>
    %81 = math.tanh %80 : vector<8x32xf32>
    %82 = vector.extract_strided_slice %79 {offsets = [0, 0], sizes = [8, 32], strides = [1, 1]} : vector<8x96xf32> to vector<8x32xf32>
    %83 = vector.extract_strided_slice %79 {offsets = [0, 32], sizes = [8, 32], strides = [1, 1]} : vector<8x96xf32> to vector<8x32xf32>
    %84 = vector.extract_strided_slice %79 {offsets = [0, 64], sizes = [8, 32], strides = [1, 1]} : vector<8x96xf32> to vector<8x32xf32>
    %85 = arith.mulf %83, %65 : vector<8x32xf32>
    %86 = arith.mulf %82, %81 : vector<8x32xf32>
    %87 = arith.addf %85, %86 : vector<8x32xf32>
    %88 = math.tanh %87 : vector<8x32xf32>
    %89 = arith.mulf %84, %88 : vector<8x32xf32>
    %90 = vector.extract_strided_slice %19 {offsets = [24, 0], sizes = [8, 128], strides = [1, 1]} : vector<64x128xf32> to vector<8x128xf32>
    %91 = arith.truncf %89 : vector<8x32xf32> to vector<8x32xbf16>
    %cst_33 = arith.constant dense<0.000000e+00> : vector<8x128xf32>
    %92 = tpu.matmul %91, %13, %cst_33 {dimension_numbers = #tpu.dot_dimension_numbers<[1], [0], [0], [1], [0, 0, 1, 1], [], []>} : vector<8x32xbf16>, vector<32x128xbf16>, vector<8x128xf32> -> vector<8x128xf32>
    %93 = arith.addf %90, %92 : vector<8x128xf32>
    %94 = vector.extract_strided_slice %93 {offsets = [0, 0], sizes = [8, 96], strides = [1, 1]} : vector<8x128xf32> to vector<8x96xf32>
    %cst_34 = arith.constant 5.000000e-01 : f32
    %95 = vector.broadcast %cst_34 : f32 to vector<8x96xf32>
    %96 = arith.mulf %95, %94 : vector<8x96xf32>
    %97 = math.tanh %96 : vector<8x96xf32>
    %cst_35 = arith.constant 5.000000e-01 : f32
    %98 = vector.broadcast %cst_35 : f32 to vector<8x96xf32>
    %99 = arith.mulf %98, %97 : vector<8x96xf32>
    %cst_36 = arith.constant 5.000000e-01 : f32
    %100 = vector.broadcast %cst_36 : f32 to vector<8x96xf32>
    %101 = arith.addf %99, %100 : vector<8x96xf32>
    %102 = vector.extract_strided_slice %93 {offsets = [0, 96], sizes = [8, 32], strides = [1, 1]} : vector<8x128xf32> to vector<8x32xf32>
    %103 = math.tanh %102 : vector<8x32xf32>
    %104 = vector.extract_strided_slice %101 {offsets = [0, 0], sizes = [8, 32], strides = [1, 1]} : vector<8x96xf32> to vector<8x32xf32>
    %105 = vector.extract_strided_slice %101 {offsets = [0, 32], sizes = [8, 32], strides = [1, 1]} : vector<8x96xf32> to vector<8x32xf32>
    %106 = vector.extract_strided_slice %101 {offsets = [0, 64], sizes = [8, 32], strides = [1, 1]} : vector<8x96xf32> to vector<8x32xf32>
    %107 = arith.mulf %105, %87 : vector<8x32xf32>
    %108 = arith.mulf %104, %103 : vector<8x32xf32>
    %109 = arith.addf %107, %108 : vector<8x32xf32>
    %110 = math.tanh %109 : vector<8x32xf32>
    %111 = arith.mulf %106, %110 : vector<8x32xf32>
    %112 = vector.extract_strided_slice %19 {offsets = [32, 0], sizes = [8, 128], strides = [1, 1]} : vector<64x128xf32> to vector<8x128xf32>
    %113 = arith.truncf %111 : vector<8x32xf32> to vector<8x32xbf16>
    %cst_37 = arith.constant dense<0.000000e+00> : vector<8x128xf32>
    %114 = tpu.matmul %113, %13, %cst_37 {dimension_numbers = #tpu.dot_dimension_numbers<[1], [0], [0], [1], [0, 0, 1, 1], [], []>} : vector<8x32xbf16>, vector<32x128xbf16>, vector<8x128xf32> -> vector<8x128xf32>
    %115 = arith.addf %112, %114 : vector<8x128xf32>
    %116 = vector.extract_strided_slice %115 {offsets = [0, 0], sizes = [8, 96], strides = [1, 1]} : vector<8x128xf32> to vector<8x96xf32>
    %cst_38 = arith.constant 5.000000e-01 : f32
    %117 = vector.broadcast %cst_38 : f32 to vector<8x96xf32>
    %118 = arith.mulf %117, %116 : vector<8x96xf32>
    %119 = math.tanh %118 : vector<8x96xf32>
    %cst_39 = arith.constant 5.000000e-01 : f32
    %120 = vector.broadcast %cst_39 : f32 to vector<8x96xf32>
    %121 = arith.mulf %120, %119 : vector<8x96xf32>
    %cst_40 = arith.constant 5.000000e-01 : f32
    %122 = vector.broadcast %cst_40 : f32 to vector<8x96xf32>
    %123 = arith.addf %121, %122 : vector<8x96xf32>
    %124 = vector.extract_strided_slice %115 {offsets = [0, 96], sizes = [8, 32], strides = [1, 1]} : vector<8x128xf32> to vector<8x32xf32>
    %125 = math.tanh %124 : vector<8x32xf32>
    %126 = vector.extract_strided_slice %123 {offsets = [0, 0], sizes = [8, 32], strides = [1, 1]} : vector<8x96xf32> to vector<8x32xf32>
    %127 = vector.extract_strided_slice %123 {offsets = [0, 32], sizes = [8, 32], strides = [1, 1]} : vector<8x96xf32> to vector<8x32xf32>
    %128 = vector.extract_strided_slice %123 {offsets = [0, 64], sizes = [8, 32], strides = [1, 1]} : vector<8x96xf32> to vector<8x32xf32>
    %129 = arith.mulf %127, %109 : vector<8x32xf32>
    %130 = arith.mulf %126, %125 : vector<8x32xf32>
    %131 = arith.addf %129, %130 : vector<8x32xf32>
    %132 = math.tanh %131 : vector<8x32xf32>
    %133 = arith.mulf %128, %132 : vector<8x32xf32>
    %134 = vector.extract_strided_slice %19 {offsets = [40, 0], sizes = [8, 128], strides = [1, 1]} : vector<64x128xf32> to vector<8x128xf32>
    %135 = arith.truncf %133 : vector<8x32xf32> to vector<8x32xbf16>
    %cst_41 = arith.constant dense<0.000000e+00> : vector<8x128xf32>
    %136 = tpu.matmul %135, %13, %cst_41 {dimension_numbers = #tpu.dot_dimension_numbers<[1], [0], [0], [1], [0, 0, 1, 1], [], []>} : vector<8x32xbf16>, vector<32x128xbf16>, vector<8x128xf32> -> vector<8x128xf32>
    %137 = arith.addf %134, %136 : vector<8x128xf32>
    %138 = vector.extract_strided_slice %137 {offsets = [0, 0], sizes = [8, 96], strides = [1, 1]} : vector<8x128xf32> to vector<8x96xf32>
    %cst_42 = arith.constant 5.000000e-01 : f32
    %139 = vector.broadcast %cst_42 : f32 to vector<8x96xf32>
    %140 = arith.mulf %139, %138 : vector<8x96xf32>
    %141 = math.tanh %140 : vector<8x96xf32>
    %cst_43 = arith.constant 5.000000e-01 : f32
    %142 = vector.broadcast %cst_43 : f32 to vector<8x96xf32>
    %143 = arith.mulf %142, %141 : vector<8x96xf32>
    %cst_44 = arith.constant 5.000000e-01 : f32
    %144 = vector.broadcast %cst_44 : f32 to vector<8x96xf32>
    %145 = arith.addf %143, %144 : vector<8x96xf32>
    %146 = vector.extract_strided_slice %137 {offsets = [0, 96], sizes = [8, 32], strides = [1, 1]} : vector<8x128xf32> to vector<8x32xf32>
    %147 = math.tanh %146 : vector<8x32xf32>
    %148 = vector.extract_strided_slice %145 {offsets = [0, 0], sizes = [8, 32], strides = [1, 1]} : vector<8x96xf32> to vector<8x32xf32>
    %149 = vector.extract_strided_slice %145 {offsets = [0, 32], sizes = [8, 32], strides = [1, 1]} : vector<8x96xf32> to vector<8x32xf32>
    %150 = vector.extract_strided_slice %145 {offsets = [0, 64], sizes = [8, 32], strides = [1, 1]} : vector<8x96xf32> to vector<8x32xf32>
    %151 = arith.mulf %149, %131 : vector<8x32xf32>
    %152 = arith.mulf %148, %147 : vector<8x32xf32>
    %153 = arith.addf %151, %152 : vector<8x32xf32>
    %154 = math.tanh %153 : vector<8x32xf32>
    %155 = arith.mulf %150, %154 : vector<8x32xf32>
    %156 = vector.extract_strided_slice %19 {offsets = [48, 0], sizes = [8, 128], strides = [1, 1]} : vector<64x128xf32> to vector<8x128xf32>
    %157 = arith.truncf %155 : vector<8x32xf32> to vector<8x32xbf16>
    %cst_45 = arith.constant dense<0.000000e+00> : vector<8x128xf32>
    %158 = tpu.matmul %157, %13, %cst_45 {dimension_numbers = #tpu.dot_dimension_numbers<[1], [0], [0], [1], [0, 0, 1, 1], [], []>} : vector<8x32xbf16>, vector<32x128xbf16>, vector<8x128xf32> -> vector<8x128xf32>
    %159 = arith.addf %156, %158 : vector<8x128xf32>
    %160 = vector.extract_strided_slice %159 {offsets = [0, 0], sizes = [8, 96], strides = [1, 1]} : vector<8x128xf32> to vector<8x96xf32>
    %cst_46 = arith.constant 5.000000e-01 : f32
    %161 = vector.broadcast %cst_46 : f32 to vector<8x96xf32>
    %162 = arith.mulf %161, %160 : vector<8x96xf32>
    %163 = math.tanh %162 : vector<8x96xf32>
    %cst_47 = arith.constant 5.000000e-01 : f32
    %164 = vector.broadcast %cst_47 : f32 to vector<8x96xf32>
    %165 = arith.mulf %164, %163 : vector<8x96xf32>
    %cst_48 = arith.constant 5.000000e-01 : f32
    %166 = vector.broadcast %cst_48 : f32 to vector<8x96xf32>
    %167 = arith.addf %165, %166 : vector<8x96xf32>
    %168 = vector.extract_strided_slice %159 {offsets = [0, 96], sizes = [8, 32], strides = [1, 1]} : vector<8x128xf32> to vector<8x32xf32>
    %169 = math.tanh %168 : vector<8x32xf32>
    %170 = vector.extract_strided_slice %167 {offsets = [0, 0], sizes = [8, 32], strides = [1, 1]} : vector<8x96xf32> to vector<8x32xf32>
    %171 = vector.extract_strided_slice %167 {offsets = [0, 32], sizes = [8, 32], strides = [1, 1]} : vector<8x96xf32> to vector<8x32xf32>
    %172 = vector.extract_strided_slice %167 {offsets = [0, 64], sizes = [8, 32], strides = [1, 1]} : vector<8x96xf32> to vector<8x32xf32>
    %173 = arith.mulf %171, %153 : vector<8x32xf32>
    %174 = arith.mulf %170, %169 : vector<8x32xf32>
    %175 = arith.addf %173, %174 : vector<8x32xf32>
    %176 = math.tanh %175 : vector<8x32xf32>
    %177 = arith.mulf %172, %176 : vector<8x32xf32>
    %178 = vector.extract_strided_slice %19 {offsets = [56, 0], sizes = [8, 128], strides = [1, 1]} : vector<64x128xf32> to vector<8x128xf32>
    %179 = arith.truncf %177 : vector<8x32xf32> to vector<8x32xbf16>
    %cst_49 = arith.constant dense<0.000000e+00> : vector<8x128xf32>
    %180 = tpu.matmul %179, %13, %cst_49 {dimension_numbers = #tpu.dot_dimension_numbers<[1], [0], [0], [1], [0, 0, 1, 1], [], []>} : vector<8x32xbf16>, vector<32x128xbf16>, vector<8x128xf32> -> vector<8x128xf32>
    %181 = arith.addf %178, %180 : vector<8x128xf32>
    %182 = vector.extract_strided_slice %181 {offsets = [0, 0], sizes = [8, 96], strides = [1, 1]} : vector<8x128xf32> to vector<8x96xf32>
    %cst_50 = arith.constant 5.000000e-01 : f32
    %183 = vector.broadcast %cst_50 : f32 to vector<8x96xf32>
    %184 = arith.mulf %183, %182 : vector<8x96xf32>
    %185 = math.tanh %184 : vector<8x96xf32>
    %cst_51 = arith.constant 5.000000e-01 : f32
    %186 = vector.broadcast %cst_51 : f32 to vector<8x96xf32>
    %187 = arith.mulf %186, %185 : vector<8x96xf32>
    %cst_52 = arith.constant 5.000000e-01 : f32
    %188 = vector.broadcast %cst_52 : f32 to vector<8x96xf32>
    %189 = arith.addf %187, %188 : vector<8x96xf32>
    %190 = vector.extract_strided_slice %181 {offsets = [0, 96], sizes = [8, 32], strides = [1, 1]} : vector<8x128xf32> to vector<8x32xf32>
    %191 = math.tanh %190 : vector<8x32xf32>
    %192 = vector.extract_strided_slice %189 {offsets = [0, 0], sizes = [8, 32], strides = [1, 1]} : vector<8x96xf32> to vector<8x32xf32>
    %193 = vector.extract_strided_slice %189 {offsets = [0, 32], sizes = [8, 32], strides = [1, 1]} : vector<8x96xf32> to vector<8x32xf32>
    %194 = vector.extract_strided_slice %189 {offsets = [0, 64], sizes = [8, 32], strides = [1, 1]} : vector<8x96xf32> to vector<8x32xf32>
    %195 = arith.mulf %193, %175 : vector<8x32xf32>
    %196 = arith.mulf %192, %191 : vector<8x32xf32>
    %197 = arith.addf %195, %196 : vector<8x32xf32>
    %198 = math.tanh %197 : vector<8x32xf32>
    %199 = arith.mulf %194, %198 : vector<8x32xf32>
    %200 = tpu.concatenate %45, %67, %89, %111, %133, %155, %177, %199 in 0 : vector<8x32xf32>, vector<8x32xf32>, vector<8x32xf32>, vector<8x32xf32>, vector<8x32xf32>, vector<8x32xf32>, vector<8x32xf32>, vector<8x32xf32> -> vector<64x32xf32>
    %c0_53 = arith.constant 0 : index
    %c0_54 = arith.constant 0 : index
    %c0_55 = arith.constant 0 : index
    %201 = vector.load %arg10[%c0_53, %c0_54, %c0_55] : memref<4x8x32xf32, #tpu.memory_space<vmem>>, vector<1x8x32xf32>
    %202 = vector.shape_cast %201 : vector<1x8x32xf32> to vector<8x32xf32>
    %203 = vector.shape_cast %199 : vector<8x32xf32> to vector<1x8x32xf32>
    tpu.vector_store %arg10[%c0_53, %c0_54, %c0_55], %203 {strides = array<i32>} : memref<4x8x32xf32, #tpu.memory_space<vmem>>, vector<1x8x32xf32>,
    %c2 = arith.constant 2 : index
    %c0_56 = arith.constant 0 : index
    %c0_57 = arith.constant 0 : index
    %204 = vector.load %arg10[%c2, %c0_56, %c0_57] : memref<4x8x32xf32, #tpu.memory_space<vmem>>, vector<1x8x32xf32>
    %205 = vector.shape_cast %204 : vector<1x8x32xf32> to vector<8x32xf32>
    %206 = vector.shape_cast %197 : vector<8x32xf32> to vector<1x8x32xf32>
    tpu.vector_store %arg10[%c2, %c0_56, %c0_57], %206 {strides = array<i32>} : memref<4x8x32xf32, #tpu.memory_space<vmem>>, vector<1x8x32xf32>,
    %c1 = arith.constant 1 : index
    %c0_58 = arith.constant 0 : index
    %c0_59 = arith.constant 0 : index
    %207 = vector.load %arg2[%c1, %c0_58, %c0_59] : memref<2x32x128xbf16, #tpu.memory_space<vmem>>, vector<1x32x128xbf16>
    %208 = vector.shape_cast %207 : vector<1x32x128xbf16> to vector<32x128xbf16>
    %c1_60 = arith.constant 1 : index
    %c0_61 = arith.constant 0 : index
    %c0_62 = arith.constant 0 : index
    %209 = vector.load %arg3[%c1_60, %c0_61, %c0_62] : memref<2x32x128xbf16, #tpu.memory_space<vmem>>, vector<1x32x128xbf16>
    %210 = vector.shape_cast %209 : vector<1x32x128xbf16> to vector<32x128xbf16>
    %211 = arith.truncf %200 : vector<64x32xf32> to vector<64x32xbf16>
    %cst_63 = arith.constant dense<0.000000e+00> : vector<64x128xf32>
    %212 = tpu.matmul %211, %208, %cst_63 {dimension_numbers = #tpu.dot_dimension_numbers<[1], [0], [0], [1], [0, 0, 1, 1], [], []>} : vector<64x32xbf16>, vector<32x128xbf16>, vector<64x128xf32> -> vector<64x128xf32>
    %c1_64 = arith.constant 1 : index
    %c0_65 = arith.constant 0 : index
    %c0_66 = arith.constant 0 : index
    %213 = vector.load %arg4[%c1_64, %c0_65, %c0_66] : memref<2x1x128xf32, #tpu.memory_space<vmem>>, vector<1x1x128xf32>
    %214 = vector.shape_cast %213 : vector<1x1x128xf32> to vector<1x128xf32>
    %215 = vector.broadcast %214 : vector<1x128xf32> to vector<64x128xf32>
    %216 = arith.addf %212, %215 : vector<64x128xf32>
    %c1_67 = arith.constant 1 : index
    %c0_68 = arith.constant 0 : index
    %c0_69 = arith.constant 0 : index
    %217 = vector.load %arg7[%c1_67, %c0_68, %c0_69] : memref<2x8x32xf32, #tpu.memory_space<vmem>>, vector<1x8x32xf32>
    %218 = vector.shape_cast %217 : vector<1x8x32xf32> to vector<8x32xf32>
    %c1_70 = arith.constant 1 : index
    %c0_71 = arith.constant 0 : index
    %c0_72 = arith.constant 0 : index
    %219 = vector.load %arg8[%c1_70, %c0_71, %c0_72] : memref<2x8x32xf32, #tpu.memory_space<vmem>>, vector<1x8x32xf32>
    %220 = vector.shape_cast %219 : vector<1x8x32xf32> to vector<8x32xf32>
    %221 = vector.extract_strided_slice %216 {offsets = [0, 0], sizes = [8, 128], strides = [1, 1]} : vector<64x128xf32> to vector<8x128xf32>
    %222 = arith.truncf %218 : vector<8x32xf32> to vector<8x32xbf16>
    %cst_73 = arith.constant dense<0.000000e+00> : vector<8x128xf32>
    %223 = tpu.matmul %222, %210, %cst_73 {dimension_numbers = #tpu.dot_dimension_numbers<[1], [0], [0], [1], [0, 0, 1, 1], [], []>} : vector<8x32xbf16>, vector<32x128xbf16>, vector<8x128xf32> -> vector<8x128xf32>
    %224 = arith.addf %221, %223 : vector<8x128xf32>
    %225 = vector.extract_strided_slice %224 {offsets = [0, 0], sizes = [8, 96], strides = [1, 1]} : vector<8x128xf32> to vector<8x96xf32>
    %cst_74 = arith.constant 5.000000e-01 : f32
    %226 = vector.broadcast %cst_74 : f32 to vector<8x96xf32>
    %227 = arith.mulf %226, %225 : vector<8x96xf32>
    %228 = math.tanh %227 : vector<8x96xf32>
    %cst_75 = arith.constant 5.000000e-01 : f32
    %229 = vector.broadcast %cst_75 : f32 to vector<8x96xf32>
    %230 = arith.mulf %229, %228 : vector<8x96xf32>
    %cst_76 = arith.constant 5.000000e-01 : f32
    %231 = vector.broadcast %cst_76 : f32 to vector<8x96xf32>
    %232 = arith.addf %230, %231 : vector<8x96xf32>
    %233 = vector.extract_strided_slice %224 {offsets = [0, 96], sizes = [8, 32], strides = [1, 1]} : vector<8x128xf32> to vector<8x32xf32>
    %234 = math.tanh %233 : vector<8x32xf32>
    %235 = vector.extract_strided_slice %232 {offsets = [0, 0], sizes = [8, 32], strides = [1, 1]} : vector<8x96xf32> to vector<8x32xf32>
    %236 = vector.extract_strided_slice %232 {offsets = [0, 32], sizes = [8, 32], strides = [1, 1]} : vector<8x96xf32> to vector<8x32xf32>
    %237 = vector.extract_strided_slice %232 {offsets = [0, 64], sizes = [8, 32], strides = [1, 1]} : vector<8x96xf32> to vector<8x32xf32>
    %238 = arith.mulf %236, %220 : vector<8x32xf32>
    %239 = arith.mulf %235, %234 : vector<8x32xf32>
    %240 = arith.addf %238, %239 : vector<8x32xf32>
    %241 = math.tanh %240 : vector<8x32xf32>
    %242 = arith.mulf %237, %241 : vector<8x32xf32>
    %243 = vector.extract_strided_slice %216 {offsets = [8, 0], sizes = [8, 128], strides = [1, 1]} : vector<64x128xf32> to vector<8x128xf32>
    %244 = arith.truncf %242 : vector<8x32xf32> to vector<8x32xbf16>
    %cst_77 = arith.constant dense<0.000000e+00> : vector<8x128xf32>
    %245 = tpu.matmul %244, %210, %cst_77 {dimension_numbers = #tpu.dot_dimension_numbers<[1], [0], [0], [1], [0, 0, 1, 1], [], []>} : vector<8x32xbf16>, vector<32x128xbf16>, vector<8x128xf32> -> vector<8x128xf32>
    %246 = arith.addf %243, %245 : vector<8x128xf32>
    %247 = vector.extract_strided_slice %246 {offsets = [0, 0], sizes = [8, 96], strides = [1, 1]} : vector<8x128xf32> to vector<8x96xf32>
    %cst_78 = arith.constant 5.000000e-01 : f32
    %248 = vector.broadcast %cst_78 : f32 to vector<8x96xf32>
    %249 = arith.mulf %248, %247 : vector<8x96xf32>
    %250 = math.tanh %249 : vector<8x96xf32>
    %cst_79 = arith.constant 5.000000e-01 : f32
    %251 = vector.broadcast %cst_79 : f32 to vector<8x96xf32>
    %252 = arith.mulf %251, %250 : vector<8x96xf32>
    %cst_80 = arith.constant 5.000000e-01 : f32
    %253 = vector.broadcast %cst_80 : f32 to vector<8x96xf32>
    %254 = arith.addf %252, %253 : vector<8x96xf32>
    %255 = vector.extract_strided_slice %246 {offsets = [0, 96], sizes = [8, 32], strides = [1, 1]} : vector<8x128xf32> to vector<8x32xf32>
    %256 = math.tanh %255 : vector<8x32xf32>
    %257 = vector.extract_strided_slice %254 {offsets = [0, 0], sizes = [8, 32], strides = [1, 1]} : vector<8x96xf32> to vector<8x32xf32>
    %258 = vector.extract_strided_slice %254 {offsets = [0, 32], sizes = [8, 32], strides = [1, 1]} : vector<8x96xf32> to vector<8x32xf32>
    %259 = vector.extract_strided_slice %254 {offsets = [0, 64], sizes = [8, 32], strides = [1, 1]} : vector<8x96xf32> to vector<8x32xf32>
    %260 = arith.mulf %258, %240 : vector<8x32xf32>
    %261 = arith.mulf %257, %256 : vector<8x32xf32>
    %262 = arith.addf %260, %261 : vector<8x32xf32>
    %263 = math.tanh %262 : vector<8x32xf32>
    %264 = arith.mulf %259, %263 : vector<8x32xf32>
    %265 = vector.extract_strided_slice %216 {offsets = [16, 0], sizes = [8, 128], strides = [1, 1]} : vector<64x128xf32> to vector<8x128xf32>
    %266 = arith.truncf %264 : vector<8x32xf32> to vector<8x32xbf16>
    %cst_81 = arith.constant dense<0.000000e+00> : vector<8x128xf32>
    %267 = tpu.matmul %266, %210, %cst_81 {dimension_numbers = #tpu.dot_dimension_numbers<[1], [0], [0], [1], [0, 0, 1, 1], [], []>} : vector<8x32xbf16>, vector<32x128xbf16>, vector<8x128xf32> -> vector<8x128xf32>
    %268 = arith.addf %265, %267 : vector<8x128xf32>
    %269 = vector.extract_strided_slice %268 {offsets = [0, 0], sizes = [8, 96], strides = [1, 1]} : vector<8x128xf32> to vector<8x96xf32>
    %cst_82 = arith.constant 5.000000e-01 : f32
    %270 = vector.broadcast %cst_82 : f32 to vector<8x96xf32>
    %271 = arith.mulf %270, %269 : vector<8x96xf32>
    %272 = math.tanh %271 : vector<8x96xf32>
    %cst_83 = arith.constant 5.000000e-01 : f32
    %273 = vector.broadcast %cst_83 : f32 to vector<8x96xf32>
    %274 = arith.mulf %273, %272 : vector<8x96xf32>
    %cst_84 = arith.constant 5.000000e-01 : f32
    %275 = vector.broadcast %cst_84 : f32 to vector<8x96xf32>
    %276 = arith.addf %274, %275 : vector<8x96xf32>
    %277 = vector.extract_strided_slice %268 {offsets = [0, 96], sizes = [8, 32], strides = [1, 1]} : vector<8x128xf32> to vector<8x32xf32>
    %278 = math.tanh %277 : vector<8x32xf32>
    %279 = vector.extract_strided_slice %276 {offsets = [0, 0], sizes = [8, 32], strides = [1, 1]} : vector<8x96xf32> to vector<8x32xf32>
    %280 = vector.extract_strided_slice %276 {offsets = [0, 32], sizes = [8, 32], strides = [1, 1]} : vector<8x96xf32> to vector<8x32xf32>
    %281 = vector.extract_strided_slice %276 {offsets = [0, 64], sizes = [8, 32], strides = [1, 1]} : vector<8x96xf32> to vector<8x32xf32>
    %282 = arith.mulf %280, %262 : vector<8x32xf32>
    %283 = arith.mulf %279, %278 : vector<8x32xf32>
    %284 = arith.addf %282, %283 : vector<8x32xf32>
    %285 = math.tanh %284 : vector<8x32xf32>
    %286 = arith.mulf %281, %285 : vector<8x32xf32>
    %287 = vector.extract_strided_slice %216 {offsets = [24, 0], sizes = [8, 128], strides = [1, 1]} : vector<64x128xf32> to vector<8x128xf32>
    %288 = arith.truncf %286 : vector<8x32xf32> to vector<8x32xbf16>
    %cst_85 = arith.constant dense<0.000000e+00> : vector<8x128xf32>
    %289 = tpu.matmul %288, %210, %cst_85 {dimension_numbers = #tpu.dot_dimension_numbers<[1], [0], [0], [1], [0, 0, 1, 1], [], []>} : vector<8x32xbf16>, vector<32x128xbf16>, vector<8x128xf32> -> vector<8x128xf32>
    %290 = arith.addf %287, %289 : vector<8x128xf32>
    %291 = vector.extract_strided_slice %290 {offsets = [0, 0], sizes = [8, 96], strides = [1, 1]} : vector<8x128xf32> to vector<8x96xf32>
    %cst_86 = arith.constant 5.000000e-01 : f32
    %292 = vector.broadcast %cst_86 : f32 to vector<8x96xf32>
    %293 = arith.mulf %292, %291 : vector<8x96xf32>
    %294 = math.tanh %293 : vector<8x96xf32>
    %cst_87 = arith.constant 5.000000e-01 : f32
    %295 = vector.broadcast %cst_87 : f32 to vector<8x96xf32>
    %296 = arith.mulf %295, %294 : vector<8x96xf32>
    %cst_88 = arith.constant 5.000000e-01 : f32
    %297 = vector.broadcast %cst_88 : f32 to vector<8x96xf32>
    %298 = arith.addf %296, %297 : vector<8x96xf32>
    %299 = vector.extract_strided_slice %290 {offsets = [0, 96], sizes = [8, 32], strides = [1, 1]} : vector<8x128xf32> to vector<8x32xf32>
    %300 = math.tanh %299 : vector<8x32xf32>
    %301 = vector.extract_strided_slice %298 {offsets = [0, 0], sizes = [8, 32], strides = [1, 1]} : vector<8x96xf32> to vector<8x32xf32>
    %302 = vector.extract_strided_slice %298 {offsets = [0, 32], sizes = [8, 32], strides = [1, 1]} : vector<8x96xf32> to vector<8x32xf32>
    %303 = vector.extract_strided_slice %298 {offsets = [0, 64], sizes = [8, 32], strides = [1, 1]} : vector<8x96xf32> to vector<8x32xf32>
    %304 = arith.mulf %302, %284 : vector<8x32xf32>
    %305 = arith.mulf %301, %300 : vector<8x32xf32>
    %306 = arith.addf %304, %305 : vector<8x32xf32>
    %307 = math.tanh %306 : vector<8x32xf32>
    %308 = arith.mulf %303, %307 : vector<8x32xf32>
    %309 = vector.extract_strided_slice %216 {offsets = [32, 0], sizes = [8, 128], strides = [1, 1]} : vector<64x128xf32> to vector<8x128xf32>
    %310 = arith.truncf %308 : vector<8x32xf32> to vector<8x32xbf16>
    %cst_89 = arith.constant dense<0.000000e+00> : vector<8x128xf32>
    %311 = tpu.matmul %310, %210, %cst_89 {dimension_numbers = #tpu.dot_dimension_numbers<[1], [0], [0], [1], [0, 0, 1, 1], [], []>} : vector<8x32xbf16>, vector<32x128xbf16>, vector<8x128xf32> -> vector<8x128xf32>
    %312 = arith.addf %309, %311 : vector<8x128xf32>
    %313 = vector.extract_strided_slice %312 {offsets = [0, 0], sizes = [8, 96], strides = [1, 1]} : vector<8x128xf32> to vector<8x96xf32>
    %cst_90 = arith.constant 5.000000e-01 : f32
    %314 = vector.broadcast %cst_90 : f32 to vector<8x96xf32>
    %315 = arith.mulf %314, %313 : vector<8x96xf32>
    %316 = math.tanh %315 : vector<8x96xf32>
    %cst_91 = arith.constant 5.000000e-01 : f32
    %317 = vector.broadcast %cst_91 : f32 to vector<8x96xf32>
    %318 = arith.mulf %317, %316 : vector<8x96xf32>
    %cst_92 = arith.constant 5.000000e-01 : f32
    %319 = vector.broadcast %cst_92 : f32 to vector<8x96xf32>
    %320 = arith.addf %318, %319 : vector<8x96xf32>
    %321 = vector.extract_strided_slice %312 {offsets = [0, 96], sizes = [8, 32], strides = [1, 1]} : vector<8x128xf32> to vector<8x32xf32>
    %322 = math.tanh %321 : vector<8x32xf32>
    %323 = vector.extract_strided_slice %320 {offsets = [0, 0], sizes = [8, 32], strides = [1, 1]} : vector<8x96xf32> to vector<8x32xf32>
    %324 = vector.extract_strided_slice %320 {offsets = [0, 32], sizes = [8, 32], strides = [1, 1]} : vector<8x96xf32> to vector<8x32xf32>
    %325 = vector.extract_strided_slice %320 {offsets = [0, 64], sizes = [8, 32], strides = [1, 1]} : vector<8x96xf32> to vector<8x32xf32>
    %326 = arith.mulf %324, %306 : vector<8x32xf32>
    %327 = arith.mulf %323, %322 : vector<8x32xf32>
    %328 = arith.addf %326, %327 : vector<8x32xf32>
    %329 = math.tanh %328 : vector<8x32xf32>
    %330 = arith.mulf %325, %329 : vector<8x32xf32>
    %331 = vector.extract_strided_slice %216 {offsets = [40, 0], sizes = [8, 128], strides = [1, 1]} : vector<64x128xf32> to vector<8x128xf32>
    %332 = arith.truncf %330 : vector<8x32xf32> to vector<8x32xbf16>
    %cst_93 = arith.constant dense<0.000000e+00> : vector<8x128xf32>
    %333 = tpu.matmul %332, %210, %cst_93 {dimension_numbers = #tpu.dot_dimension_numbers<[1], [0], [0], [1], [0, 0, 1, 1], [], []>} : vector<8x32xbf16>, vector<32x128xbf16>, vector<8x128xf32> -> vector<8x128xf32>
    %334 = arith.addf %331, %333 : vector<8x128xf32>
    %335 = vector.extract_strided_slice %334 {offsets = [0, 0], sizes = [8, 96], strides = [1, 1]} : vector<8x128xf32> to vector<8x96xf32>
    %cst_94 = arith.constant 5.000000e-01 : f32
    %336 = vector.broadcast %cst_94 : f32 to vector<8x96xf32>
    %337 = arith.mulf %336, %335 : vector<8x96xf32>
    %338 = math.tanh %337 : vector<8x96xf32>
    %cst_95 = arith.constant 5.000000e-01 : f32
    %339 = vector.broadcast %cst_95 : f32 to vector<8x96xf32>
    %340 = arith.mulf %339, %338 : vector<8x96xf32>
    %cst_96 = arith.constant 5.000000e-01 : f32
    %341 = vector.broadcast %cst_96 : f32 to vector<8x96xf32>
    %342 = arith.addf %340, %341 : vector<8x96xf32>
    %343 = vector.extract_strided_slice %334 {offsets = [0, 96], sizes = [8, 32], strides = [1, 1]} : vector<8x128xf32> to vector<8x32xf32>
    %344 = math.tanh %343 : vector<8x32xf32>
    %345 = vector.extract_strided_slice %342 {offsets = [0, 0], sizes = [8, 32], strides = [1, 1]} : vector<8x96xf32> to vector<8x32xf32>
    %346 = vector.extract_strided_slice %342 {offsets = [0, 32], sizes = [8, 32], strides = [1, 1]} : vector<8x96xf32> to vector<8x32xf32>
    %347 = vector.extract_strided_slice %342 {offsets = [0, 64], sizes = [8, 32], strides = [1, 1]} : vector<8x96xf32> to vector<8x32xf32>
    %348 = arith.mulf %346, %328 : vector<8x32xf32>
    %349 = arith.mulf %345, %344 : vector<8x32xf32>
    %350 = arith.addf %348, %349 : vector<8x32xf32>
    %351 = math.tanh %350 : vector<8x32xf32>
    %352 = arith.mulf %347, %351 : vector<8x32xf32>
    %353 = vector.extract_strided_slice %216 {offsets = [48, 0], sizes = [8, 128], strides = [1, 1]} : vector<64x128xf32> to vector<8x128xf32>
    %354 = arith.truncf %352 : vector<8x32xf32> to vector<8x32xbf16>
    %cst_97 = arith.constant dense<0.000000e+00> : vector<8x128xf32>
    %355 = tpu.matmul %354, %210, %cst_97 {dimension_numbers = #tpu.dot_dimension_numbers<[1], [0], [0], [1], [0, 0, 1, 1], [], []>} : vector<8x32xbf16>, vector<32x128xbf16>, vector<8x128xf32> -> vector<8x128xf32>
    %356 = arith.addf %353, %355 : vector<8x128xf32>
    %357 = vector.extract_strided_slice %356 {offsets = [0, 0], sizes = [8, 96], strides = [1, 1]} : vector<8x128xf32> to vector<8x96xf32>
    %cst_98 = arith.constant 5.000000e-01 : f32
    %358 = vector.broadcast %cst_98 : f32 to vector<8x96xf32>
    %359 = arith.mulf %358, %357 : vector<8x96xf32>
    %360 = math.tanh %359 : vector<8x96xf32>
    %cst_99 = arith.constant 5.000000e-01 : f32
    %361 = vector.broadcast %cst_99 : f32 to vector<8x96xf32>
    %362 = arith.mulf %361, %360 : vector<8x96xf32>
    %cst_100 = arith.constant 5.000000e-01 : f32
    %363 = vector.broadcast %cst_100 : f32 to vector<8x96xf32>
    %364 = arith.addf %362, %363 : vector<8x96xf32>
    %365 = vector.extract_strided_slice %356 {offsets = [0, 96], sizes = [8, 32], strides = [1, 1]} : vector<8x128xf32> to vector<8x32xf32>
    %366 = math.tanh %365 : vector<8x32xf32>
    %367 = vector.extract_strided_slice %364 {offsets = [0, 0], sizes = [8, 32], strides = [1, 1]} : vector<8x96xf32> to vector<8x32xf32>
    %368 = vector.extract_strided_slice %364 {offsets = [0, 32], sizes = [8, 32], strides = [1, 1]} : vector<8x96xf32> to vector<8x32xf32>
    %369 = vector.extract_strided_slice %364 {offsets = [0, 64], sizes = [8, 32], strides = [1, 1]} : vector<8x96xf32> to vector<8x32xf32>
    %370 = arith.mulf %368, %350 : vector<8x32xf32>
    %371 = arith.mulf %367, %366 : vector<8x32xf32>
    %372 = arith.addf %370, %371 : vector<8x32xf32>
    %373 = math.tanh %372 : vector<8x32xf32>
    %374 = arith.mulf %369, %373 : vector<8x32xf32>
    %375 = vector.extract_strided_slice %216 {offsets = [56, 0], sizes = [8, 128], strides = [1, 1]} : vector<64x128xf32> to vector<8x128xf32>
    %376 = arith.truncf %374 : vector<8x32xf32> to vector<8x32xbf16>
    %cst_101 = arith.constant dense<0.000000e+00> : vector<8x128xf32>
    %377 = tpu.matmul %376, %210, %cst_101 {dimension_numbers = #tpu.dot_dimension_numbers<[1], [0], [0], [1], [0, 0, 1, 1], [], []>} : vector<8x32xbf16>, vector<32x128xbf16>, vector<8x128xf32> -> vector<8x128xf32>
    %378 = arith.addf %375, %377 : vector<8x128xf32>
    %379 = vector.extract_strided_slice %378 {offsets = [0, 0], sizes = [8, 96], strides = [1, 1]} : vector<8x128xf32> to vector<8x96xf32>
    %cst_102 = arith.constant 5.000000e-01 : f32
    %380 = vector.broadcast %cst_102 : f32 to vector<8x96xf32>
    %381 = arith.mulf %380, %379 : vector<8x96xf32>
    %382 = math.tanh %381 : vector<8x96xf32>
    %cst_103 = arith.constant 5.000000e-01 : f32
    %383 = vector.broadcast %cst_103 : f32 to vector<8x96xf32>
    %384 = arith.mulf %383, %382 : vector<8x96xf32>
    %cst_104 = arith.constant 5.000000e-01 : f32
    %385 = vector.broadcast %cst_104 : f32 to vector<8x96xf32>
    %386 = arith.addf %384, %385 : vector<8x96xf32>
    %387 = vector.extract_strided_slice %378 {offsets = [0, 96], sizes = [8, 32], strides = [1, 1]} : vector<8x128xf32> to vector<8x32xf32>
    %388 = math.tanh %387 : vector<8x32xf32>
    %389 = vector.extract_strided_slice %386 {offsets = [0, 0], sizes = [8, 32], strides = [1, 1]} : vector<8x96xf32> to vector<8x32xf32>
    %390 = vector.extract_strided_slice %386 {offsets = [0, 32], sizes = [8, 32], strides = [1, 1]} : vector<8x96xf32> to vector<8x32xf32>
    %391 = vector.extract_strided_slice %386 {offsets = [0, 64], sizes = [8, 32], strides = [1, 1]} : vector<8x96xf32> to vector<8x32xf32>
    %392 = arith.mulf %390, %372 : vector<8x32xf32>
    %393 = arith.mulf %389, %388 : vector<8x32xf32>
    %394 = arith.addf %392, %393 : vector<8x32xf32>
    %395 = math.tanh %394 : vector<8x32xf32>
    %396 = arith.mulf %391, %395 : vector<8x32xf32>
    %397 = tpu.concatenate %242, %264, %286, %308, %330, %352, %374, %396 in 0 : vector<8x32xf32>, vector<8x32xf32>, vector<8x32xf32>, vector<8x32xf32>, vector<8x32xf32>, vector<8x32xf32>, vector<8x32xf32>, vector<8x32xf32> -> vector<64x32xf32>
    %c1_105 = arith.constant 1 : index
    %c0_106 = arith.constant 0 : index
    %c0_107 = arith.constant 0 : index
    %398 = vector.load %arg10[%c1_105, %c0_106, %c0_107] : memref<4x8x32xf32, #tpu.memory_space<vmem>>, vector<1x8x32xf32>
    %399 = vector.shape_cast %398 : vector<1x8x32xf32> to vector<8x32xf32>
    %400 = vector.shape_cast %396 : vector<8x32xf32> to vector<1x8x32xf32>
    tpu.vector_store %arg10[%c1_105, %c0_106, %c0_107], %400 {strides = array<i32>} : memref<4x8x32xf32, #tpu.memory_space<vmem>>, vector<1x8x32xf32>,
    %c3 = arith.constant 3 : index
    %c0_108 = arith.constant 0 : index
    %c0_109 = arith.constant 0 : index
    %401 = vector.load %arg10[%c3, %c0_108, %c0_109] : memref<4x8x32xf32, #tpu.memory_space<vmem>>, vector<1x8x32xf32>
    %402 = vector.shape_cast %401 : vector<1x8x32xf32> to vector<8x32xf32>
    %403 = vector.shape_cast %394 : vector<8x32xf32> to vector<1x8x32xf32>
    tpu.vector_store %arg10[%c3, %c0_108, %c0_109], %403 {strides = array<i32>} : memref<4x8x32xf32, #tpu.memory_space<vmem>>, vector<1x8x32xf32>,
    %404 = arith.truncf %397 : vector<64x32xf32> to vector<64x32xbf16>
    %c0_110 = arith.constant 0 : index
    %c0_111 = arith.constant 0 : index
    %405 = vector.load %arg5[%c0_110, %c0_111] : memref<32x128xbf16, #tpu.memory_space<vmem>>, vector<32x128xbf16>
    %cst_112 = arith.constant dense<0.000000e+00> : vector<64x128xf32>
    %406 = tpu.matmul %404, %405, %cst_112 {dimension_numbers = #tpu.dot_dimension_numbers<[1], [0], [0], [1], [0, 0, 1, 1], [], []>} : vector<64x32xbf16>, vector<32x128xbf16>, vector<64x128xf32> -> vector<64x128xf32>
    %c0_113 = arith.constant 0 : index
    %c0_114 = arith.constant 0 : index
    %407 = vector.load %arg6[%c0_113, %c0_114] : memref<1x128xf32, #tpu.memory_space<vmem>>, vector<1x128xf32>
    %408 = vector.broadcast %407 : vector<1x128xf32> to vector<64x128xf32>
    %409 = arith.addf %406, %408 : vector<64x128xf32>
    %c0_115 = arith.constant 0 : index
    %c0_116 = arith.constant 0 : index
    %410 = vector.load %arg9[%c0_115, %c0_116] : memref<64x128xf32, #tpu.memory_space<vmem>>, vector<64x128xf32>
    tpu.vector_store %arg9[%c0_115, %c0_116], %409 {strides = array<i32>} : memref<64x128xf32, #tpu.memory_space<vmem>>, vector<64x128xf32>,
    return
  }
}

</mosaic_0001>

<bundles_post_ra>
// kernel: tpu_custom_call.1
= control target key start
LH: loop header
LB: loop body
LE: loop exit
PB: predicated region body
PF: predicated region fallthrough
CT: control target
= control target key end

     0   :  { %16 = vsyncpa [#allocation3], 0  ;;  %v2292_v2 = vmov 0   ;;  %s2815_s0 = inlined_call_operand.vmem [shape: s32[64,1], index: 0, kind: input, shape index: {}]   ;;  %s2816_s1 = inlined_call_operand.vmem [shape: bf16[128,32], index: 1, kind: input, shape index: {}]   ;;  %s2817_s2 = inlined_call_operand.vmem [shape: bf16[2,32,128], index: 2, kind: input, shape index: {}]   ;;  %s2818_s3 = inlined_call_operand.vmem [shape: bf16[2,32,128], index: 3, kind: input, shape index: {}]   ;;  %s2819_s4 = inlined_call_operand.vmem [shape: f32[2,1,128], index: 4, kind: input, shape index: {}]   ;;  %s2820_s5 = inlined_call_operand.vmem [shape: bf16[32,128], index: 5, kind: input, shape index: {}]   ;;  %s2821_s6 = inlined_call_operand.vmem [shape: f32[1,128], index: 6, kind: input, shape index: {}]   ;;  %s2822_s7 = inlined_call_operand.vmem [shape: f32[2,8,32], index: 7, kind: input, shape index: {}]   ;;  %s2823_s8 = inlined_call_operand.vmem [shape: f32[2,8,32], index: 8, kind: input, shape index: {}]   ;;  %s2824_s9 = inlined_call_operand.hbm [shape: f32[64,128], index: 9, kind: output, shape index: {0}]   ;;  %s2825_s10 = inlined_call_operand.hbm [shape: f32[4,8,32], index: 10, kind: output, shape index: {1}]  }
   0x1   :  { %v39_v0 = vld [vmem:[%s2815_s0 + $0x10] sm:$0xff]  ;;  %v37_v1 = vld [vmem:[%s2815_s0] sm:$0xff]  ;;  %2129 = vset.pattern.permute.xlu1 %v2292_v2  ;;  %2128 = vset.pattern.permute.xlu0 %v2292_v2  ;;  %v40_v3 = vld [vmem:[%s2815_s0 + $0x18] sm:$0xff] }
   0x2   :  { %54 = vperm.xlu1 %2129, %v39_v0   ;;  %48 = vperm.xlu0 %2128, %v37_v1   ;;  %v38_v4 = vld [vmem:[%s2815_s0 + $0x8] sm:$0xff]  ;;  %v2130_v5 = vld [vmem:[%s2816_s1] sm:$0xff]   ;;  %v2132_v9 = vld [vmem:[%s2816_s1 + $0x10] sm:$0xff]  }
   0x3   :  { %v2131_v6 = vld [vmem:[%s2816_s1 + $0x8] sm:$0xff]   ;;  %1929 = vmatprep.subr.bf16.mxu0 %v2130_v5  ;;  %v41_v8 = vld [vmem:[%s2815_s0 + $0x20] sm:$0xff]  ;;  %v44_v10 = vld [vmem:[%s2815_s0 + $0x38] sm:$0xff] }
   0x4   :  { %v42_v7 = vld [vmem:[%s2815_s0 + $0x28] sm:$0xff]  ;;  %1930 = vmatpush3.bf16.msra.mxu0 %v2130_v5  ;;  %v43_v11 = vld [vmem:[%s2815_s0 + $0x30] sm:$0xff]  ;;  %v2133_v12 = vld [vmem:[%s2816_s1 + $0x18] sm:$0xff]  }
   0x5   :  { %1931 = vmatprep.subr.bf16.mxu0 %v2131_v6  ;;  %v2134_v13 = vld [vmem:[%s2816_s1 + $0x20] sm:$0xff]  }
   0x6   :  { %57 = vperm.xlu1 %2129, %v40_v3   ;;  %51 = vperm.xlu0 %2128, %v38_v4  }
   0x8   :  { %1932 = vmatpush3.bf16.msra.mxu0 %v2131_v6 }
   0x9   :  { %1933 = vmatprep.subr.bf16.mxu0 %v2132_v9 }
   0xa   :  { %63 = vperm.xlu1 %2129, %v42_v7   ;;  %60 = vperm.xlu0 %2128, %v41_v8  }
   0xc   :  { %1934 = vmatpush3.bf16.msra.mxu0 %v2132_v9 }
   0xd   :  { %1935 = vmatprep.subr.bf16.mxu0 %v2133_v12 }
   0xe   :  { %69 = vperm.xlu1 %2129, %v44_v10   ;;  %66 = vperm.xlu0 %2128, %v43_v11  }
   0xf   :  { %17 = vsyncpa [#allocation5], 0  ;;  %v2138_v14 = vld [vmem:[%s2817_s2] sm:$0xff]   ;;  %v2135_v15 = vld [vmem:[%s2816_s1 + $0x28] sm:$0xff]   ;;  %v45_v18 = vlaneseq  ;;  %v2293_v24 = vmov 1.0|1.0  }
  0x10   :  { %1936 = vmatpush3.bf16.msra.mxu0 %v2133_v12  ;;  %1953 = vmatprep.subr.bf16.mxu1 %v2138_v14  ;;  %v2136_v16 = vld [vmem:[%s2816_s1 + $0x30] sm:$0xff]   ;;  %v2137_v17 = vld [vmem:[%s2816_s1 + $0x38] sm:$0xff]   ;;  %v2139_v29 = vld [vmem:[%s2817_s2 + $0x8] sm:$0xff]   ;;  %v2294_v30 = vmov 0.0   ;;  %vm2295_vm12 = vmmov 0   ;;  %s2296_s13 = smov 32  }
  0x11   :  { %1937 = vmatprep.subr.bf16.mxu0 %v2134_v13  ;;  %1954 = vmatpush3.bf16.msra.mxu1 %v2138_v14  ;;  %v46_v21 = vand.u32 127, %v45_v18  ;;  %v2416_v31 = vld [vmem:[%s2818_s3] sm:$0xff]   ;;  %v2424_v32 = vld [vmem:[%s2818_s3 + $0x8] sm:$0xff]   ;;  %vm251_vm13 = vcmask 261120   ;;  %s2297_s18 = smov 64   ;;  %s2299_s30 = smov [#allocation4]  }
  0x12   :  { %1955 = vmatprep.subr.bf16.mxu1 %v2139_v29  ;;  %v330_v33 = vld [vmem:[%s2823_s8] sm:$0xff]  ;;  %s1768_s11 = sshll.u32 %s2299_s30, 4  ;;  %s1769_s11 = int_to_ptr.vmem [resolvable:$true] %s1768_s11 }
  0x13   :  { %394 = vrot.lane.b32.xlu1 %v330_v33, %s2296_s13  ;;  %v329_v46 = vld [vmem:[%s2822_s7] sm:$0xff]  ;;  %s2244_s12 = scalar_lea.vmem %s1769_s11, 512  ;;  %p2249_p1 = scmp.lt.s32.totalorder %s1769_s11, %s1769_s11 }
  0x14   :  { %1938 = vmatpush3.bf16.msra.mxu0 %v2134_v13  ;;  %v331_v47 = vpack.c.bf16 %v329_v46, %v329_v46  ;;  %v1799_v48 = vld [vmem:[%s2819_s4] ss:$0 sm:$0xff]  ;;  %p2245_p0 = scmp.ne.s32.totalorder %s1769_s11, %s2244_s12  ;;  %p2250_p2 = scmp.lt.s32.totalorder %s2244_s12, %s2244_s12 }
  0x15   :  { %1939 = vmatprep.subr.bf16.mxu0 %v2135_v15  ;;  %1956 = vmatpush3.bf16.msra.mxu1 %v2139_v29 }
  0x16   :  { %1965 = vmatprep.subr.bf16.mxu1 %v2294_v30  ;;  %p2251_p3 = por %p2250_p2, %p2249_p1 }
  0x18   :  { %1940 = vmatpush3.bf16.msra.mxu0 %v2135_v15  ;;  %p2252_p4 = pnand %p2251_p3, %p2245_p0 }
  0x19   :  { %1941 = vmatprep.subr.bf16.mxu0 %v2136_v16 }
  0x1c   :  { %1942 = vmatpush3.bf16.msra.mxu0 %v2136_v16 }
  0x1d   :  { %1943 = vmatprep.subr.bf16.mxu0 %v2137_v17 }
  0x20   :  { %1944 = vmatpush3.bf16.msra.mxu0 %v2137_v17 }
  0x21   :  { %1989 = vmatprep.subr.bf16.mxu0 %v2294_v30 }
  0x81   :  { %v55_v19 = vpop.permute.xlu1 %54  ;;  %v49_v20 = vpop.permute.xlu0 %48 }
  0x82   :  { %vm73_vm0 = vcmp.eq.s32.totalorder %v55_v19, %v46_v21  ;;  %vm71_vm3 = vcmp.eq.s32.totalorder %v49_v20, %v46_v21 }
  0x85   :  { %v58_v22 = vpop.permute.xlu1 %57  ;;  %v52_v23 = vpop.permute.xlu0 %51 }
  0x86   :  { %vm74_vm1 = vcmp.eq.s32.totalorder %v58_v22, %v46_v21  ;;  %vm72_vm2 = vcmp.eq.s32.totalorder %v52_v23, %v46_v21 }
  0x87   :  { %vm1793_vm4 = vmpackc.low %vm74_vm1, %vm73_vm0 }
  0x88   :  { %vm1791_vm5 = vmpackc.low %vm72_vm2, %vm71_vm3 }
  0x89   :  { %1945 = vmatprep.mubr.msk.bf16.mxu0 %vm1791_vm5, %v2293_v24  ;;  %v64_v25 = vpop.permute.xlu1 %63  ;;  %v61_v26 = vpop.permute.xlu0 %60 }
  0x8a   :  { %vm76_vm6 = vcmp.eq.s32.totalorder %v64_v25, %v46_v21  ;;  %1946 = vmatmul.mubr.msk.bf16.vlgmr.msra.gmra.mrb[0].mxu0 %vm1793_vm4, %v2293_v24  ;;  %vm75_vm7 = vcmp.eq.s32.totalorder %v61_v26, %v46_v21 }
  0x8b   :  { %vm1795_vm8 = vmpackc.low %vm76_vm6, %vm75_vm7  ;;  %1990 = vmatpush3.bf16.msra.mxu0 %v2416_v31 }
  0x8c   :  { %1949 = vmatprep.mubr.msk.bf16.mxu0 %vm1795_vm8, %v2293_v24  ;;  %1991 = vmatprep.subr.bf16.mxu0 %v2294_v30 }
  0x8d   :  { %v70_v27 = vpop.permute.xlu1 %69  ;;  %v67_v28 = vpop.permute.xlu0 %66 }
  0x8e   :  { %vm78_vm9 = vcmp.eq.s32.totalorder %v70_v27, %v46_v21  ;;  %vm77_vm10 = vcmp.eq.s32.totalorder %v67_v28, %v46_v21 }
  0x8f   :  { %vm1797_vm11 = vmpackc.low %vm78_vm9, %vm77_vm10  ;;  %1992 = vmatpush3.bf16.msra.mxu0 %v2424_v32 }
  0x90   :  { %2005 = vmatprep.subr.bf16.mxu0 %v2294_v30 }
  0x91   :  { %v395_v13 = vpop.permute.xlu1 %394 }
  0x92   :  { %1950 = vmatmul.mubr.msk.bf16.gmra.mrb[4].mxu0 %vm1797_vm11, %v2293_v24 }
  0x93   :  { %1993 = vmatprep.mubr.msk.bf16.mxu0 %vm2295_vm12, %v2294_v30 }
 0x15d   :  { %v1947_v34 = vpop.f32.mrb[0].mxu0 }
 0x15e   :  { %v189_v35 = vpop.f32.mrb[1].mxu0 }
 0x15f   :  { %v1948_v36 = vpop.f32.mrb[2].mxu0 }
 0x160   :  { %v229_v37 = vpack.c.bf16 %v1948_v36, %v1947_v34  ;;  %v192_v38 = vpop.f32.mrb[3].mxu0 }
 0x161   :  { %v228_v39 = vpack.c.bf16 %v192_v38, %v189_v35 }
 0x163   :  { %1957 = vmatprep.mubr.msk.bf16.mxu1 %vm251_vm13, %v228_v39 }
 0x164   :  { %1958 = vmatmul.mubr.msk.bf16.vlgmr.msra.gmra.mrb[0].mxu1 %vm251_vm13, %v229_v37 }
 0x165   :  { %1966 = vmatpush3.bf16.msra.mxu1 %v2416_v31  ;;  %v1951_v40 = vpop.f32.mrb[4].mxu0 }
 0x166   :  { %v205_v41 = vpop.f32.mrb[5].mxu0  ;;  %1967 = vmatprep.subr.bf16.mxu1 %v2294_v30 }
 0x167   :  { %v1952_v42 = vpop.f32.mrb[6].mxu0 }
 0x168   :  { %v231_v43 = vpack.c.bf16 %v1952_v42, %v1951_v40  ;;  %v208_v44 = vpop.f32.mrb[7].mxu0 }
 0x169   :  { %v230_v45 = vpack.c.bf16 %v208_v44, %v205_v41  ;;  %1968 = vmatpush3.bf16.msra.mxu1 %v2424_v32 }
 0x16a   :  { %1973 = vmatprep.subr.bf16.mxu1 %v2294_v30 }
 0x16b   :  { %1961 = vmatprep.mubr.msk.bf16.mxu1 %vm251_vm13, %v230_v45 }
 0x16c   :  { %1962 = vmatmul.mubr.msk.bf16.gmra.mrb[4].mxu1 %vm251_vm13, %v231_v43 }
 0x16d   :  { %1969 = vmatprep.mubr.msk.bf16.mxu1 %vm2295_vm12, %v2294_v30 }
 0x174   :  { %1970 = vmatmul.mubr.msk.bf16.vlgmr.msra.gmra.mrb[8].mxu1 %vm251_vm13, %v331_v47 }
 0x175   :  { %1974 = vmatpush3.bf16.msra.mxu1 %v2416_v31  ;;  %1977 = vmatprep.mubr.msk.bf16.mxu1 %vm2295_vm12, %v2294_v30 }
 0x176   :  { %1975 = vmatprep.subr.bf16.mxu1 %v2294_v30 }
 0x179   :  { %1976 = vmatpush3.bf16.msra.mxu1 %v2424_v32 }
 0x17a   :  { %1981 = vmatprep.subr.bf16.mxu1 %v2294_v30 }
 0x237   :  { %v1959_v49 = vpop.f32.mrb[0].mxu1 }
 0x238   :  { %v2457_v50 = vadd.f32 %v1959_v49, %v1799_v48  ;;  %v298_v51 = vpop.f32.mrb[1].mxu1 }
 0x239   :  { %v1960_v52 = vpop.f32.mrb[2].mxu1  ;;  %v299_v0 = vadd.f32 %v1799_v48, %v298_v51 }
 0x23a   :  { %v2459_v53 = vadd.f32 %v1960_v52, %v1799_v48  ;;  %v301_v54 = vpop.f32.mrb[3].mxu1 }
 0x23b   :  { %v302_v55 = vadd.f32 %v1799_v48, %v301_v54 }
 0x23f   :  { %v1963_v56 = vpop.f32.mrb[4].mxu1 }
 0x240   :  { %v2461_v57 = vadd.f32 %v1963_v56, %v1799_v48  ;;  %v314_v58 = vpop.f32.mrb[5].mxu1 }
 0x241   :  { %v2463_v59 = vadd.f32 %v1799_v48, %v314_v58  ;;  %v1964_v60 = vpop.f32.mrb[6].mxu1 }
 0x242   :  { %v2465_v61 = vadd.f32 %v1964_v60, %v1799_v48  ;;  %v317_v62 = vpop.f32.mrb[7].mxu1 }
 0x243   :  { %v2467_v63 = vadd.f32 %v1799_v48, %v317_v62 }
 0x247   :  { %v381_v1 = vpop.f32.mrb[8].mxu1 }
 0x248   :  { %v387_v2 = vadd.f32 %v381_v1, %v299_v0  ;;  %v1971_v3 = vpop.f32.mrb[9].mxu1 }
 0x249   :  { %v384_v4 = vpop.f32.mrb[10].mxu1 }
 0x24a   :  { %2148 = vtanh.f32 %v387_v2  ;;  %v1972_v5 = vpop.f32.mrb[11].mxu1  ;;  %v388_v7 = vmul.f32 0.5, %v387_v2 }
 0x24c   :  { %2150 = vtanh.f32 %v388_v7 }
 0x254   :  { %v2149_v6 = vpop.eup %2148 }
 0x255   :  { %399 = vrot.lane.b32.xlu0 %v2149_v6, %s2296_s13 }
 0x256   :  { %v2151_v8 = vpop.eup %2150 }
 0x257   :  { %v390_v9 = vmul.f32 0.5, %v2151_v8 }
 0x259   :  { %v391_v10 = vadd.f32 0.5, %v390_v9 }
 0x25b   :  { %v397_v14 = vmul.f32 %v395_v13, %v391_v10 }
 0x2c7   :  { %v400_v11 = vpop.permute.xlu0 %399 }
 0x2c8   :  { %v402_v12 = vmul.f32 %v400_v11, %v391_v10 }
 0x2ca   :  { %404 = vrot.lane.b32.xlu0 %v402_v12, %s2296_s13 }
 0x33c   :  { %v405_v15 = vpop.permute.xlu0 %404 }
 0x33d   :  { %v407_v16 = vadd.f32 %v405_v15, %v397_v14 }
 0x33f   :  { %2152 = vtanh.f32 %v407_v16 }
 0x349   :  { %v2153_v17 = vpop.eup %2152 }
 0x34a   :  { %410 = vrot.lane.b32.xlu1 %v2153_v17, %s2296_s13 }
 0x3bc   :  { %v411_v18 = vpop.permute.xlu1 %410 }
 0x3bd   :  { %v2472_v19 = vmul.f32 %v411_v18, %v391_v10 }
 0x3bf   :  { %v414_v20 = vpack.c.bf16 %v2472_v19, %v2472_v19 }
 0x3c1   :  { %416 = vrot.lane.b32.xlu0 %v414_v20, %s2297_s18 }
 0x433   :  { %v417_v21 = vpop.permute.xlu0 %416 }
 0x434   :  { %1978 = vmatmul.mubr.msk.bf16.vlgmr.msra.gmra.mrb[12].mxu1 %vm251_vm13, %v417_v21 }
 0x435   :  { %1982 = vmatpush3.bf16.msra.mxu1 %v2416_v31  ;;  %1985 = vmatprep.mubr.msk.bf16.mxu1 %vm2295_vm12, %v2294_v30 }
 0x436   :  { %1983 = vmatprep.subr.bf16.mxu1 %v2294_v30 }
 0x439   :  { %1984 = vmatpush3.bf16.msra.mxu1 %v2424_v32 }
 0x43a   :  { %1997 = vmatprep.subr.bf16.mxu1 %v2294_v30 }
 0x507   :  { %v455_v22 = vpop.f32.mrb[12].mxu1 }
 0x508   :  { %v461_v23 = vadd.f32 %v455_v22, %v302_v55  ;;  %v1979_v24 = vpop.f32.mrb[13].mxu1 }
 0x509   :  { %v458_v25 = vpop.f32.mrb[14].mxu1 }
 0x50a   :  { %2154 = vtanh.f32 %v461_v23  ;;  %v1980_v26 = vpop.f32.mrb[15].mxu1  ;;  %v462_v28 = vmul.f32 0.5, %v461_v23 }
 0x50c   :  { %2156 = vtanh.f32 %v462_v28 }
 0x514   :  { %v2155_v27 = vpop.eup %2154 }
 0x515   :  { %469 = vrot.lane.b32.xlu1 %v2155_v27, %s2296_s13 }
 0x516   :  { %v2157_v29 = vpop.eup %2156 }
 0x517   :  { %v464_v33 = vmul.f32 0.5, %v2157_v29 }
 0x519   :  { %v465_v34 = vadd.f32 0.5, %v464_v33 }
 0x51b   :  { %v467_v37 = vmul.f32 %v465_v34, %v407_v16 }
 0x587   :  { %v470_v35 = vpop.permute.xlu1 %469 }
 0x588   :  { %v472_v36 = vmul.f32 %v470_v35, %v465_v34 }
 0x58a   :  { %474 = vrot.lane.b32.xlu0 %v472_v36, %s2296_s13 }
 0x5fc   :  { %v475_v38 = vpop.permute.xlu0 %474 }
 0x5fd   :  { %v477_v39 = vadd.f32 %v475_v38, %v467_v37 }
 0x5ff   :  { %2158 = vtanh.f32 %v477_v39 }
 0x609   :  { %v2159_v40 = vpop.eup %2158 }
 0x60a   :  { %480 = vrot.lane.b32.xlu1 %v2159_v40, %s2296_s13 }
 0x67c   :  { %v481_v41 = vpop.permute.xlu1 %480 }
 0x67d   :  { %v2487_v42 = vmul.f32 %v481_v41, %v465_v34 }
 0x67f   :  { %v484_v43 = vpack.c.bf16 %v2487_v42, %v2487_v42 }
 0x681   :  { %486 = vrot.lane.b32.xlu0 %v484_v43, %s2297_s18 }
 0x6f3   :  { %v487_v44 = vpop.permute.xlu0 %486 }
 0x6f4   :  { %1986 = vmatmul.mubr.msk.bf16.vlgmr.msra.gmra.mrb[16].mxu1 %vm251_vm13, %v487_v44 }
 0x6f5   :  { %1998 = vmatpush3.bf16.msra.mxu1 %v2416_v31  ;;  %2001 = vmatprep.mubr.msk.bf16.mxu1 %vm2295_vm12, %v2294_v30 }
 0x6f6   :  { %1999 = vmatprep.subr.bf16.mxu1 %v2294_v30 }
 0x6f9   :  { %2000 = vmatpush3.bf16.msra.mxu1 %v2424_v32 }
 0x6fa   :  { %2013 = vmatprep.subr.bf16.mxu1 %v2294_v30 }
 0x7c7   :  { %v525_v45 = vpop.f32.mrb[16].mxu1 }
 0x7c8   :  { %v531_v46 = vadd.f32 %v525_v45, %v2457_v50  ;;  %v1987_v47 = vpop.f32.mrb[17].mxu1 }
 0x7c9   :  { %v528_v48 = vpop.f32.mrb[18].mxu1 }
 0x7ca   :  { %2160 = vtanh.f32 %v531_v46  ;;  %v1988_v49 = vpop.f32.mrb[19].mxu1  ;;  %v532_v52 = vmul.f32 0.5, %v531_v46 }
 0x7cc   :  { %2162 = vtanh.f32 %v532_v52 }
 0x7d4   :  { %v2161_v51 = vpop.eup %2160 }
 0x7d5   :  { %539 = vrot.lane.b32.xlu1 %v2161_v51, %s2296_s13 }
 0x7d6   :  { %v2163_v54 = vpop.eup %2162 }
 0x7d7   :  { %v534_v55 = vmul.f32 0.5, %v2163_v54 }
 0x7d9   :  { %v535_v56 = vadd.f32 0.5, %v534_v55 }
 0x7db   :  { %v537_v62 = vmul.f32 %v535_v56, %v477_v39 }
 0x847   :  { %v540_v58 = vpop.permute.xlu1 %539 }
 0x848   :  { %v542_v60 = vmul.f32 %v540_v58, %v535_v56 }
 0x84a   :  { %544 = vrot.lane.b32.xlu0 %v542_v60, %s2296_s13 }
 0x8bc   :  { %v545_v0 = vpop.permute.xlu0 %544 }
 0x8bd   :  { %v547_v1 = vadd.f32 %v545_v0, %v537_v62 }
 0x8bf   :  { %2164 = vtanh.f32 %v547_v1 }
 0x8c9   :  { %v2165_v50 = vpop.eup %2164 }
 0x8ca   :  { %550 = vrot.lane.b32.xlu1 %v2165_v50, %s2296_s13 }
 0x93c   :  { %v551_v2 = vpop.permute.xlu1 %550 }
 0x93d   :  { %v2503_v3 = vmul.f32 %v551_v2, %v535_v56 }
 0x93f   :  { %v554_v4 = vpack.c.bf16 %v2503_v3, %v2503_v3 }
 0x941   :  { %556 = vrot.lane.b32.xlu0 %v554_v4, %s2297_s18 }
 0x9b3   :  { %v557_v5 = vpop.permute.xlu0 %556 }
 0x9b4   :  { %1994 = vmatmul.mubr.msk.bf16.vlgmr.msra.gmra.mrb[8].mxu0 %vm251_vm13, %v557_v5 }
 0x9b5   :  { %2006 = vmatpush3.bf16.msra.mxu0 %v2416_v31  ;;  %2009 = vmatprep.mubr.msk.bf16.mxu0 %vm2295_vm12, %v2294_v30 }
 0x9b6   :  { %2007 = vmatprep.subr.bf16.mxu0 %v2294_v30 }
 0x9b9   :  { %2008 = vmatpush3.bf16.msra.mxu0 %v2424_v32 }
 0x9ba   :  { %2021 = vmatprep.subr.bf16.mxu0 %v2294_v30 }
 0xa87   :  { %v595_v6 = vpop.f32.mrb[8].mxu0 }
 0xa88   :  { %v601_v7 = vadd.f32 %v595_v6, %v2459_v53  ;;  %v1995_v8 = vpop.f32.mrb[9].mxu0 }
 0xa89   :  { %v598_v9 = vpop.f32.mrb[10].mxu0 }
 0xa8a   :  { %2166 = vtanh.f32 %v601_v7  ;;  %v1996_v10 = vpop.f32.mrb[11].mxu0  ;;  %v602_v12 = vmul.f32 0.5, %v601_v7 }
 0xa8c   :  { %2168 = vtanh.f32 %v602_v12 }
 0xa94   :  { %v2167_v11 = vpop.eup %2166 }
 0xa95   :  { %609 = vrot.lane.b32.xlu1 %v2167_v11, %s2296_s13 }
 0xa96   :  { %v2169_v13 = vpop.eup %2168 }
 0xa97   :  { %v604_v14 = vmul.f32 0.5, %v2169_v13 }
 0xa99   :  { %v605_v15 = vadd.f32 0.5, %v604_v14 }
 0xa9b   :  { %v607_v18 = vmul.f32 %v605_v15, %v547_v1 }
 0xb07   :  { %v610_v16 = vpop.permute.xlu1 %609 }
 0xb08   :  { %v612_v17 = vmul.f32 %v610_v16, %v605_v15 }
 0xb0a   :  { %614 = vrot.lane.b32.xlu0 %v612_v17, %s2296_s13 }
 0xb7c   :  { %v615_v20 = vpop.permute.xlu0 %614 }
 0xb7d   :  { %v617_v21 = vadd.f32 %v615_v20, %v607_v18 }
 0xb7f   :  { %2170 = vtanh.f32 %v617_v21 }
 0xb89   :  { %v2171_v53 = vpop.eup %2170 }
 0xb8a   :  { %620 = vrot.lane.b32.xlu1 %v2171_v53, %s2296_s13 }
 0xbfc   :  { %v621_v22 = vpop.permute.xlu1 %620 }
 0xbfd   :  { %v2519_v23 = vmul.f32 %v621_v22, %v605_v15 }
 0xbff   :  { %v624_v24 = vpack.c.bf16 %v2519_v23, %v2519_v23 }
 0xc01   :  { %626 = vrot.lane.b32.xlu0 %v624_v24, %s2297_s18 }
 0xc73   :  { %v627_v25 = vpop.permute.xlu0 %626 }
 0xc74   :  { %2002 = vmatmul.mubr.msk.bf16.vlgmr.msra.gmra.mrb[20].mxu1 %vm251_vm13, %v627_v25  ;;  %v925_v25 = vpack.c.bf16 %v2487_v42, %v2472_v19  ;;  %v926_v19 = vpack.c.bf16 %v2519_v23, %v2503_v3  ;;  %v1833_v42 = vld [vmem:[%s2823_s8 + $0x8] sm:$0xff]  ;;  %v2596_v3 = vld [vmem:[%s2818_s3 + $0x18] sm:$0xff]  }
 0xc75   :  { %2014 = vmatpush3.bf16.msra.mxu1 %v2416_v31  ;;  %2017 = vmatprep.mubr.msk.bf16.mxu1 %vm2295_vm12, %v2294_v30  ;;  %v1832_v23 = vld [vmem:[%s2822_s7 + $0x8] sm:$0xff] }
 0xc76   :  { %2015 = vmatprep.subr.bf16.mxu1 %v2294_v30 }
 0xc79   :  { %2016 = vmatpush3.bf16.msra.mxu1 %v2424_v32 }
 0xd47   :  { %v665_v26 = vpop.f32.mrb[20].mxu1 }
 0xd48   :  { %v671_v27 = vadd.f32 %v665_v26, %v2463_v59  ;;  %v2003_v28 = vpop.f32.mrb[21].mxu1  ;;  %v2143_v26 = vld [vmem:[%s2817_s2 + $0x18] sm:$0xff]  }
 0xd49   :  { %v668_v29 = vpop.f32.mrb[22].mxu1 }
 0xd4a   :  { %2172 = vtanh.f32 %v671_v27  ;;  %v2004_v33 = vpop.f32.mrb[23].mxu1  ;;  %v672_v35 = vmul.f32 0.5, %v671_v27 }
 0xd4c   :  { %2174 = vtanh.f32 %v672_v35 }
 0xd54   :  { %v2173_v34 = vpop.eup %2172 }
 0xd55   :  { %679 = vrot.lane.b32.xlu1 %v2173_v34, %s2296_s13  ;;  %v2589_v34 = vld [vmem:[%s2818_s3 + $0x10] sm:$0xff]  }
 0xd56   :  { %v2175_v36 = vpop.eup %2174 }
 0xd57   :  { %v674_v37 = vmul.f32 0.5, %v2175_v36 }
 0xd59   :  { %v675_v38 = vadd.f32 0.5, %v674_v37  ;;  %v1042_v37 = vpack.c.bf16 %v1832_v23, %v1832_v23 }
 0xd5b   :  { %v677_v41 = vmul.f32 %v675_v38, %v617_v21 }
 0xdc7   :  { %v680_v39 = vpop.permute.xlu1 %679 }
 0xdc8   :  { %v682_v40 = vmul.f32 %v680_v39, %v675_v38 }
 0xdca   :  { %684 = vrot.lane.b32.xlu0 %v682_v40, %s2296_s13 }
 0xe3c   :  { %v685_v43 = vpop.permute.xlu0 %684 }
 0xe3d   :  { %v687_v44 = vadd.f32 %v685_v43, %v677_v41 }
 0xe3f   :  { %2176 = vtanh.f32 %v687_v44 }
 0xe49   :  { %v2177_v59 = vpop.eup %2176 }
 0xe4a   :  { %690 = vrot.lane.b32.xlu1 %v2177_v59, %s2296_s13 }
 0xebc   :  { %v691_v45 = vpop.permute.xlu1 %690 }
 0xebd   :  { %v2534_v46 = vmul.f32 %v691_v45, %v675_v38 }
 0xebf   :  { %v694_v47 = vpack.c.bf16 %v2534_v46, %v2534_v46 }
 0xec1   :  { %696 = vrot.lane.b32.xlu0 %v694_v47, %s2297_s18 }
 0xf33   :  { %v697_v48 = vpop.permute.xlu0 %696 }
 0xf34   :  { %2010 = vmatmul.mubr.msk.bf16.vlgmr.msra.gmra.mrb[12].mxu0 %vm251_vm13, %v697_v48 }
 0xf35   :  { %2022 = vmatpush3.bf16.msra.mxu0 %v2416_v31  ;;  %2025 = vmatprep.mubr.msk.bf16.mxu0 %vm2295_vm12, %v2294_v30 }
 0xf36   :  { %2023 = vmatprep.subr.bf16.mxu0 %v2294_v30 }
 0xf39   :  { %2024 = vmatpush3.bf16.msra.mxu0 %v2424_v32 }
 0xf3a   :  { %2041 = vmatprep.subr.bf16.mxu0 %v2294_v30 }
0x1007   :  { %v735_v49 = vpop.f32.mrb[12].mxu0 }
0x1008   :  { %v741_v51 = vadd.f32 %v735_v49, %v2467_v63  ;;  %v2011_v52 = vpop.f32.mrb[13].mxu0 }
0x1009   :  { %v738_v54 = vpop.f32.mrb[14].mxu0 }
0x100a   :  { %2178 = vtanh.f32 %v741_v51  ;;  %v2012_v55 = vpop.f32.mrb[15].mxu0  ;;  %v742_v31 = vmul.f32 0.5, %v741_v51 }
0x100c   :  { %2180 = vtanh.f32 %v742_v31 }
0x1014   :  { %v2179_v56 = vpop.eup %2178 }
0x1015   :  { %749 = vrot.lane.b32.xlu1 %v2179_v56, %s2296_s13 }
0x1016   :  { %v2181_v58 = vpop.eup %2180 }
0x1017   :  { %v744_v60 = vmul.f32 0.5, %v2181_v58 }
0x1019   :  { %v745_v62 = vadd.f32 0.5, %v744_v60 }
0x101b   :  { %v747_v32 = vmul.f32 %v745_v62, %v687_v44  ;;  %v2622_v44 = vld [vmem:[%s2819_s4 + $0x1] ss:$0 sm:$0xff] }
0x1087   :  { %v750_v0 = vpop.permute.xlu1 %749 }
0x1088   :  { %v752_v1 = vmul.f32 %v750_v0, %v745_v62 }
0x108a   :  { %754 = vrot.lane.b32.xlu0 %v752_v1, %s2296_s13 }
0x10fc   :  { %v755_v50 = vpop.permute.xlu0 %754 }
0x10fd   :  { %v757_v2 = vadd.f32 %v755_v50, %v747_v32 }
0x10ff   :  { %2182 = vtanh.f32 %v757_v2 }
0x1109   :  { %v2183_v63 = vpop.eup %2182 }
0x110a   :  { %760 = vrot.lane.b32.xlu1 %v2183_v63, %s2296_s13 }
0x117c   :  { %v761_v4 = vpop.permute.xlu1 %760 }
0x117d   :  { %v2550_v5 = vmul.f32 %v761_v4, %v745_v62 }
0x117f   :  { %v764_v6 = vpack.c.bf16 %v2550_v5, %v2550_v5 }
0x1181   :  { %766 = vrot.lane.b32.xlu0 %v764_v6, %s2297_s18 }
0x11f3   :  { %v767_v7 = vpop.permute.xlu0 %766 }
0x11f4   :  { %2018 = vmatmul.mubr.msk.bf16.vlgmr.msra.gmra.mrb[24].mxu1 %vm251_vm13, %v767_v7 }
0x12c7   :  { %v805_v8 = vpop.f32.mrb[24].mxu1 }
0x12c8   :  { %v811_v9 = vadd.f32 %v805_v8, %v2461_v57  ;;  %v2019_v10 = vpop.f32.mrb[25].mxu1  ;;  %v2142_v57 = vld [vmem:[%s2817_s2 + $0x10] sm:$0xff]  }
0x12c9   :  { %v808_v11 = vpop.f32.mrb[26].mxu1  ;;  %2029 = vmatprep.subr.bf16.mxu1 %v2142_v57 }
0x12ca   :  { %2184 = vtanh.f32 %v811_v9  ;;  %v2020_v12 = vpop.f32.mrb[27].mxu1  ;;  %v812_v14 = vmul.f32 0.5, %v811_v9  ;;  %2030 = vmatpush3.bf16.msra.mxu1 %v2142_v57 }
0x12cb   :  { %2031 = vmatprep.subr.bf16.mxu1 %v2143_v26 }
0x12cc   :  { %2186 = vtanh.f32 %v812_v14 }
0x12ce   :  { %2032 = vmatpush3.bf16.msra.mxu1 %v2143_v26 }
0x12cf   :  { %2057 = vmatprep.subr.bf16.mxu1 %v2294_v30 }
0x12d4   :  { %v2185_v13 = vpop.eup %2184 }
0x12d5   :  { %819 = vrot.lane.b32.xlu1 %v2185_v13, %s2296_s13 }
0x12d6   :  { %v2187_v15 = vpop.eup %2186 }
0x12d7   :  { %v814_v16 = vmul.f32 0.5, %v2187_v15 }
0x12d9   :  { %v815_v17 = vadd.f32 0.5, %v814_v16 }
0x12db   :  { %v817_v21 = vmul.f32 %v815_v17, %v757_v2 }
0x1347   :  { %v820_v18 = vpop.permute.xlu1 %819 }
0x1348   :  { %v822_v20 = vmul.f32 %v820_v18, %v815_v17 }
0x134a   :  { %824 = vrot.lane.b32.xlu0 %v822_v20, %s2296_s13 }
0x13bc   :  { %v825_v53 = vpop.permute.xlu0 %824 }
0x13bd   :  { %v2559_v22 = vadd.f32 %v825_v53, %v817_v21  ;;  %v927_v53 = vpack.c.bf16 %v2550_v5, %v2534_v46 }
0x13bf   :  { %2188 = vtanh.f32 %v2559_v22 }
0x13c9   :  { %v2189_v24 = vpop.eup %2188 }
0x13ca   :  { %830 = vrot.lane.b32.xlu1 %v2189_v24, %s2296_s13 }
0x13ce   :  { %941 = vrot.lane.b32.xlu1 %v925_v25, %s2297_s18 }
0x143c   :  { %v831_v27 = vpop.permute.xlu1 %830 }
0x143d   :  { %v2573_v28 = vmul.f32 %v831_v27, %v815_v17 }
0x143f   :  { %v834_v29 = vpack.c.bf16 %v2573_v28, %v2573_v28 }
0x1440   :  { %v942_v33 = vpop.permute.xlu1 %941 }
0x1441   :  { %836 = vrot.lane.b32.xlu0 %v834_v29, %s2297_s18  ;;  %2033 = vmatprep.mubr.msk.bf16.mxu1 %vm251_vm13, %v942_v33 }
0x1445   :  { %943 = vrot.lane.b32.xlu0 %v926_v19, %s2297_s18 }
0x1449   :  { %1105 = vrot.lane.b32.xlu0 %v1833_v42, %s2296_s13 }
0x14b3   :  { %v837_v35 = vpop.permute.xlu0 %836 }
0x14b4   :  { %2026 = vmatmul.mubr.msk.bf16.vlgmr.msra.gmra.mrb[16].mxu0 %vm251_vm13, %v837_v35 }
0x14b5   :  { %2042 = vmatpush3.bf16.msra.mxu0 %v2589_v34  ;;  %2045 = vmatprep.mubr.msk.bf16.mxu0 %vm2295_vm12, %v2294_v30 }
0x14b6   :  { %2043 = vmatprep.subr.bf16.mxu0 %v2294_v30 }
0x14b7   :  { %v944_v36 = vpop.permute.xlu0 %943 }
0x14b8   :  { %2034 = vmatmul.mubr.msk.bf16.vlgmr.msra.gmra.mrb[28].mxu1 %vm251_vm13, %v944_v36 }
0x14b9   :  { %2044 = vmatpush3.bf16.msra.mxu0 %v2596_v3  ;;  %2058 = vmatpush3.bf16.msra.mxu1 %v2589_v34 }
0x14ba   :  { %2049 = vmatprep.subr.bf16.mxu0 %v2294_v30  ;;  %2059 = vmatprep.subr.bf16.mxu1 %v2294_v30 }
0x14bb   :  { %v1106_v32 = vpop.permute.xlu0 %1105 }
0x14bc   :  { %2046 = vmatmul.mubr.msk.bf16.vlgmr.msra.gmra.mrb[20].mxu0 %vm251_vm13, %v1042_v37 }
0x14bd   :  { %2050 = vmatpush3.bf16.msra.mxu0 %v2589_v34  ;;  %2053 = vmatprep.mubr.msk.bf16.mxu0 %vm2295_vm12, %v2294_v30 }
0x14be   :  { %2051 = vmatprep.subr.bf16.mxu0 %v2294_v30  ;;  %2060 = vmatpush3.bf16.msra.mxu1 %v2596_v3 }
0x14bf   :  { %2073 = vmatprep.subr.bf16.mxu1 %v2294_v30 }
0x14c1   :  { %2052 = vmatpush3.bf16.msra.mxu0 %v2596_v3 }
0x14c2   :  { %2065 = vmatprep.subr.bf16.mxu0 %v2294_v30 }
0x1587   :  { %v875_v38 = vpop.f32.mrb[16].mxu0 }
0x1588   :  { %v881_v39 = vadd.f32 %v875_v38, %v2465_v61  ;;  %v2027_v40 = vpop.f32.mrb[17].mxu0 }
0x1589   :  { %v878_v41 = vpop.f32.mrb[18].mxu0 }
0x158a   :  { %v2028_v43 = vpop.f32.mrb[19].mxu0  ;;  %v882_v7 = vmul.f32 0.5, %v881_v39 }
0x158b   :  { %v2624_v59 = vpop.f32.mrb[28].mxu1 }
0x158c   :  { %v1007_v45 = vpop.f32.mrb[29].mxu1 }
0x158d   :  { %v1008_v47 = vadd.f32 %v2622_v44, %v1007_v45  ;;  %v2627_v48 = vpop.f32.mrb[30].mxu1 }
0x158e   :  { %v1010_v49 = vpop.f32.mrb[31].mxu1 }
0x158f   :  { %v1092_v51 = vpop.f32.mrb[20].mxu0  ;;  %v1011_v24 = vadd.f32 %v2622_v44, %v1010_v49 }
0x1590   :  { %v1098_v52 = vadd.f32 %v1092_v51, %v1008_v47  ;;  %v2047_v54 = vpop.f32.mrb[21].mxu0 }
0x1591   :  { %v1095_v61 = vpop.f32.mrb[22].mxu0 }
0x1592   :  { %2190 = vtanh.f32 %v1098_v52  ;;  %v2048_v55 = vpop.f32.mrb[23].mxu0  ;;  %v1099_v31 = vmul.f32 0.5, %v1098_v52 }
0x1594   :  { %2192 = vtanh.f32 %v1099_v31 }
0x159c   :  { %v2191_v56 = vpop.eup %2190 }
0x159d   :  { %1110 = vrot.lane.b32.xlu1 %v2191_v56, %s2296_s13  ;;  %v1016_v56 = vadd.f32 %v2624_v59, %v2622_v44 }
0x159e   :  { %v2193_v58 = vpop.eup %2192 }
0x159f   :  { %v1101_v60 = vmul.f32 0.5, %v2193_v58 }
0x15a1   :  { %v1102_v62 = vadd.f32 0.5, %v1101_v60 }
0x15a3   :  { %v1108_v50 = vmul.f32 %v1106_v32, %v1102_v62 }
0x160f   :  { %v1111_v0 = vpop.permute.xlu1 %1110 }
0x1610   :  { %v1113_v1 = vmul.f32 %v1111_v0, %v1102_v62 }
0x1612   :  { %1115 = vrot.lane.b32.xlu1 %v1113_v1, %s2296_s13 }
0x1684   :  { %v1116_v2 = vpop.permute.xlu1 %1115 }
0x1685   :  { %v1118_v63 = vadd.f32 %v1116_v2, %v1108_v50 }
0x1687   :  { %2194 = vtanh.f32 %v1118_v63 }
0x1688   :  { %2196 = vtanh.f32 %v881_v39 }
0x1689   :  { %2198 = vtanh.f32 %v882_v7 }
0x1691   :  { %v2195_v4 = vpop.eup %2194 }
0x1692   :  { %1121 = vrot.lane.b32.xlu0 %v2195_v4, %s2296_s13  ;;  %v2197_v6 = vpop.eup %2196 }
0x1693   :  { %v2199_v8 = vpop.eup %2198 }
0x1694   :  { %v884_v9 = vmul.f32 0.5, %v2199_v8 }
0x1696   :  { %889 = vrot.lane.b32.xlu0 %v2197_v6, %s2296_s13  ;;  %v885_v13 = vadd.f32 0.5, %v884_v9 }
0x1698   :  { %v887_v17 = vmul.f32 %v885_v13, %v2559_v22 }
0x1704   :  { %v1122_v10 = vpop.permute.xlu0 %1121 }
0x1705   :  { %v2633_v11 = vmul.f32 %v1122_v10, %v1102_v62 }
0x1707   :  { %v1125_v12 = vpack.c.bf16 %v2633_v11, %v2633_v11 }
0x1708   :  { %v890_v14 = vpop.permute.xlu0 %889 }
0x1709   :  { %v892_v15 = vmul.f32 %v890_v14, %v885_v13  ;;  %1127 = vrot.lane.b32.xlu1 %v1125_v12, %s2297_s18 }
0x170b   :  { %894 = vrot.lane.b32.xlu0 %v892_v15, %s2296_s13  ;;  %v1019_v15 = vadd.f32 %v2627_v48, %v2622_v44 }
0x177b   :  { %v1128_v16 = vpop.permute.xlu1 %1127 }
0x177c   :  { %2054 = vmatmul.mubr.msk.bf16.vlgmr.msra.gmra.mrb[24].mxu0 %vm251_vm13, %v1128_v16 }
0x177d   :  { %v895_v18 = vpop.permute.xlu0 %894  ;;  %2066 = vmatpush3.bf16.msra.mxu0 %v2589_v34  ;;  %2069 = vmatprep.mubr.msk.bf16.mxu0 %vm2295_vm12, %v2294_v30 }
0x177e   :  { %v2644_v20 = vadd.f32 %v895_v18, %v887_v17  ;;  %2067 = vmatprep.subr.bf16.mxu0 %v2294_v30 }
0x1780   :  { %2200 = vtanh.f32 %v2644_v20 }
0x1781   :  { %2068 = vmatpush3.bf16.msra.mxu0 %v2596_v3 }
0x1782   :  { %2081 = vmatprep.subr.bf16.mxu0 %v2294_v30 }
0x178a   :  { %v2201_v21 = vpop.eup %2200 }
0x178b   :  { %900 = vrot.lane.b32.xlu0 %v2201_v21, %s2296_s13 }
0x178f   :  { %945 = vrot.lane.b32.xlu0 %v927_v53, %s2297_s18 }
0x17fd   :  { %v901_v22 = vpop.permute.xlu0 %900 }
0x17fe   :  { %v2658_v40 = vmul.f32 %v901_v22, %v885_v13 }
0x1800   :  { %v928_v43 = vpack.c.bf16 %v2658_v40, %v2573_v28 }
0x1801   :  { %v946_v57 = vpop.permute.xlu0 %945 }
0x1802   :  { %2037 = vmatprep.mubr.msk.bf16.mxu1 %vm251_vm13, %v946_v57 }
0x184f   :  { %v1166_v25 = vpop.f32.mrb[24].mxu0 }
0x1850   :  { %v1172_v26 = vadd.f32 %v1166_v25, %v1011_v24  ;;  %v2055_v27 = vpop.f32.mrb[25].mxu0 }
0x1851   :  { %v1169_v29 = vpop.f32.mrb[26].mxu0 }
0x1852   :  { %2202 = vtanh.f32 %v1172_v26  ;;  %v2056_v33 = vpop.f32.mrb[27].mxu0  ;;  %v1173_v42 = vmul.f32 0.5, %v1172_v26 }
0x1854   :  { %2204 = vtanh.f32 %v1173_v42 }
0x185c   :  { %v2203_v19 = vpop.eup %2202 }
0x185d   :  { %1180 = vrot.lane.b32.xlu1 %v2203_v19, %s2296_s13 }
0x185e   :  { %v2205_v46 = vpop.eup %2204 }
0x185f   :  { %v1175_v5 = vmul.f32 0.5, %v2205_v46 }
0x1861   :  { %v1176_v35 = vadd.f32 0.5, %v1175_v5 }
0x1863   :  { %v1178_v37 = vmul.f32 %v1176_v35, %v1118_v63 }
0x18cf   :  { %v1181_v23 = vpop.permute.xlu1 %1180 }
0x18d0   :  { %v1183_v36 = vmul.f32 %v1181_v23, %v1176_v35 }
0x18d2   :  { %1185 = vrot.lane.b32.xlu1 %v1183_v36, %s2296_s13 }
0x1944   :  { %v1186_v38 = vpop.permute.xlu1 %1185 }
0x1945   :  { %v1188_v39 = vadd.f32 %v1186_v38, %v1178_v37 }
0x1947   :  { %2206 = vtanh.f32 %v1188_v39 }
0x1951   :  { %v2207_v41 = vpop.eup %2206 }
0x1952   :  { %1191 = vrot.lane.b32.xlu1 %v2207_v41, %s2296_s13 }
0x1956   :  { %947 = vrot.lane.b32.xlu1 %v928_v43, %s2297_s18 }
0x19c4   :  { %v1192_v45 = vpop.permute.xlu1 %1191 }
0x19c5   :  { %v2664_v47 = vmul.f32 %v1192_v45, %v1176_v35 }
0x19c7   :  { %v1195_v49 = vpack.c.bf16 %v2664_v47, %v2664_v47 }
0x19c8   :  { %v948_v51 = vpop.permute.xlu1 %947 }
0x19c9   :  { %1197 = vrot.lane.b32.xlu0 %v1195_v49, %s2297_s18  ;;  %2038 = vmatmul.mubr.msk.bf16.gmra.mrb[32].mxu1 %vm251_vm13, %v948_v51 }
0x19ca   :  { %2061 = vmatprep.mubr.msk.bf16.mxu1 %vm2295_vm12, %v2294_v30 }
0x1a3b   :  { %v1198_v52 = vpop.permute.xlu0 %1197 }
0x1a3c   :  { %2062 = vmatmul.mubr.msk.bf16.vlgmr.msra.gmra.mrb[36].mxu1 %vm251_vm13, %v1198_v52 }
0x1a3d   :  { %2074 = vmatpush3.bf16.msra.mxu1 %v2589_v34  ;;  %2077 = vmatprep.mubr.msk.bf16.mxu1 %vm2295_vm12, %v2294_v30 }
0x1a3e   :  { %2075 = vmatprep.subr.bf16.mxu1 %v2294_v30 }
0x1a41   :  { %2076 = vmatpush3.bf16.msra.mxu1 %v2596_v3 }
0x1a42   :  { %2089 = vmatprep.subr.bf16.mxu1 %v2294_v30 }
0x1a9c   :  { %v2679_v28 = vpop.f32.mrb[32].mxu1 }
0x1a9d   :  { %v2681_v54 = vpop.f32.mrb[33].mxu1 }
0x1a9e   :  { %v2683_v61 = vpop.f32.mrb[34].mxu1  ;;  %v1024_v36 = vadd.f32 %v2622_v44, %v2681_v54 }
0x1a9f   :  { %v2685_v55 = vpop.f32.mrb[35].mxu1 }
0x1b0f   :  { %v1236_v31 = vpop.f32.mrb[36].mxu1 }
0x1b10   :  { %v1242_v58 = vadd.f32 %v1236_v31, %v1016_v56  ;;  %v2063_v60 = vpop.f32.mrb[37].mxu1 }
0x1b11   :  { %v1239_v62 = vpop.f32.mrb[38].mxu1 }
0x1b12   :  { %2208 = vtanh.f32 %v1242_v58  ;;  %v2064_v0 = vpop.f32.mrb[39].mxu1  ;;  %v1243_v32 = vmul.f32 0.5, %v1242_v58 }
0x1b14   :  { %2210 = vtanh.f32 %v1243_v32 }
0x1b1c   :  { %v2209_v1 = vpop.eup %2208 }
0x1b1d   :  { %1250 = vrot.lane.b32.xlu1 %v2209_v1, %s2296_s13 }
0x1b1e   :  { %v2211_v50 = vpop.eup %2210 }
0x1b1f   :  { %v1245_v2 = vmul.f32 0.5, %v2211_v50 }
0x1b21   :  { %v1246_v63 = vadd.f32 0.5, %v1245_v2 }
0x1b23   :  { %v1248_v7 = vmul.f32 %v1246_v63, %v1188_v39 }
0x1b8f   :  { %v1251_v4 = vpop.permute.xlu1 %1250 }
0x1b90   :  { %v1253_v6 = vmul.f32 %v1251_v4, %v1246_v63 }
0x1b92   :  { %1255 = vrot.lane.b32.xlu0 %v1253_v6, %s2296_s13 }
0x1c04   :  { %v1256_v59 = vpop.permute.xlu0 %1255 }
0x1c05   :  { %v1258_v8 = vadd.f32 %v1256_v59, %v1248_v7 }
0x1c07   :  { %2212 = vtanh.f32 %v1258_v8 }
0x1c11   :  { %v2213_v9 = vpop.eup %2212 }
0x1c12   :  { %1261 = vrot.lane.b32.xlu1 %v2213_v9, %s2296_s13 }
0x1c84   :  { %v1262_v10 = vpop.permute.xlu1 %1261 }
0x1c85   :  { %v2692_v12 = vmul.f32 %v1262_v10, %v1246_v63  ;;  %v1027_v63 = vadd.f32 %v2622_v44, %v2685_v55 }
0x1c87   :  { %v1265_v13 = vpack.c.bf16 %v2692_v12, %v2692_v12 }
0x1c89   :  { %1267 = vrot.lane.b32.xlu0 %v1265_v13, %s2297_s18 }
0x1cfb   :  { %v1268_v14 = vpop.permute.xlu0 %1267 }
0x1cfc   :  { %2070 = vmatmul.mubr.msk.bf16.vlgmr.msra.gmra.mrb[28].mxu0 %vm251_vm13, %v1268_v14 }
0x1cfd   :  { %2082 = vmatpush3.bf16.msra.mxu0 %v2589_v34  ;;  %2085 = vmatprep.mubr.msk.bf16.mxu0 %vm2295_vm12, %v2294_v30 }
0x1cfe   :  { %2083 = vmatprep.subr.bf16.mxu0 %v2294_v30 }
0x1d01   :  { %2084 = vmatpush3.bf16.msra.mxu0 %v2596_v3 }
0x1d02   :  { %2097 = vmatprep.subr.bf16.mxu0 %v2294_v30 }
0x1dcf   :  { %v1306_v16 = vpop.f32.mrb[28].mxu0 }
0x1dd0   :  { %v1312_v17 = vadd.f32 %v1306_v16, %v1019_v15  ;;  %v2071_v18 = vpop.f32.mrb[29].mxu0 }
0x1dd1   :  { %v1309_v21 = vpop.f32.mrb[30].mxu0 }
0x1dd2   :  { %2214 = vtanh.f32 %v1312_v17  ;;  %v2072_v53 = vpop.f32.mrb[31].mxu0  ;;  %v1313_v57 = vmul.f32 0.5, %v1312_v17 }
0x1dd4   :  { %2216 = vtanh.f32 %v1313_v57  ;;  %v1032_v57 = vadd.f32 %v2679_v28, %v2622_v44 }
0x1ddc   :  { %v2215_v22 = vpop.eup %2214 }
0x1ddd   :  { %1320 = vrot.lane.b32.xlu1 %v2215_v22, %s2296_s13 }
0x1dde   :  { %v2217_v24 = vpop.eup %2216 }
0x1ddf   :  { %v1315_v25 = vmul.f32 0.5, %v2217_v24 }
0x1de1   :  { %v1316_v26 = vadd.f32 0.5, %v1315_v25 }
0x1de3   :  { %v1318_v33 = vmul.f32 %v1316_v26, %v1258_v8 }
0x1e4f   :  { %v1321_v27 = vpop.permute.xlu1 %1320 }
0x1e50   :  { %v1323_v29 = vmul.f32 %v1321_v27, %v1316_v26 }
0x1e52   :  { %1325 = vrot.lane.b32.xlu0 %v1323_v29, %s2296_s13 }
0x1ec4   :  { %v1326_v48 = vpop.permute.xlu0 %1325 }
0x1ec5   :  { %v1328_v19 = vadd.f32 %v1326_v48, %v1318_v33 }
0x1ec7   :  { %2218 = vtanh.f32 %v1328_v19 }
0x1ed1   :  { %v2219_v42 = vpop.eup %2218 }
0x1ed2   :  { %1331 = vrot.lane.b32.xlu1 %v2219_v42, %s2296_s13 }
0x1f44   :  { %v1332_v46 = vpop.permute.xlu1 %1331 }
0x1f45   :  { %v2709_v5 = vmul.f32 %v1332_v46, %v1316_v26 }
0x1f47   :  { %v1335_v35 = vpack.c.bf16 %v2709_v5, %v2709_v5 }
0x1f49   :  { %1337 = vrot.lane.b32.xlu0 %v1335_v35, %s2297_s18 }
0x1fbb   :  { %v1338_v23 = vpop.permute.xlu0 %1337 }
0x1fbc   :  { %2078 = vmatmul.mubr.msk.bf16.vlgmr.msra.gmra.mrb[40].mxu1 %vm251_vm13, %v1338_v23 }
0x1fbd   :  { %2090 = vmatpush3.bf16.msra.mxu1 %v2589_v34  ;;  %2093 = vmatprep.mubr.msk.bf16.mxu1 %vm2295_vm12, %v2294_v30 }
0x1fbe   :  { %2091 = vmatprep.subr.bf16.mxu1 %v2294_v30 }
0x1fc1   :  { %2092 = vmatpush3.bf16.msra.mxu1 %v2596_v3 }
0x208f   :  { %v1376_v37 = vpop.f32.mrb[40].mxu1 }
0x2090   :  { %v1382_v38 = vadd.f32 %v1376_v37, %v1024_v36  ;;  %v2079_v39 = vpop.f32.mrb[41].mxu1 }
0x2091   :  { %v1379_v41 = vpop.f32.mrb[42].mxu1 }
0x2092   :  { %2220 = vtanh.f32 %v1382_v38  ;;  %v2080_v43 = vpop.f32.mrb[43].mxu1  ;;  %v1383_v49 = vmul.f32 0.5, %v1382_v38 }
0x2094   :  { %2222 = vtanh.f32 %v1383_v49  ;;  %v1035_v49 = vadd.f32 %v2683_v61, %v2622_v44  ;;  %v1627_v44 = vpack.c.bf16 %v2664_v47, %v2633_v11  ;;  %v2146_v61 = vld [vmem:[%s2820_s5] sm:$0xff]   ;;  %v2147_v11 = vld [vmem:[%s2820_s5 + $0x8] sm:$0xff]   ;;  %s2298_s5 = smov 96  }
0x2095   :  { %2105 = vmatprep.subr.bf16.mxu1 %v2146_v61 }
0x209c   :  { %v2221_v45 = vpop.eup %2220 }
0x209d   :  { %1390 = vrot.lane.b32.xlu1 %v2221_v45, %s2296_s13 }
0x209e   :  { %v2223_v51 = vpop.eup %2222 }
0x209f   :  { %v1385_v52 = vmul.f32 0.5, %v2223_v51 }
0x20a1   :  { %v1386_v56 = vadd.f32 0.5, %v1385_v52 }
0x20a3   :  { %v1388_v60 = vmul.f32 %v1386_v56, %v1328_v19 }
0x210f   :  { %v1391_v31 = vpop.permute.xlu1 %1390 }
0x2110   :  { %v1393_v58 = vmul.f32 %v1391_v31, %v1386_v56 }
0x2112   :  { %1395 = vrot.lane.b32.xlu0 %v1393_v58, %s2296_s13 }
0x2184   :  { %v1396_v54 = vpop.permute.xlu0 %1395 }
0x2185   :  { %v1398_v62 = vadd.f32 %v1396_v54, %v1388_v60 }
0x2187   :  { %2224 = vtanh.f32 %v1398_v62 }
0x2191   :  { %v2225_v0 = vpop.eup %2224 }
0x2192   :  { %1401 = vrot.lane.b32.xlu1 %v2225_v0, %s2296_s13 }
0x2204   :  { %v1402_v1 = vpop.permute.xlu1 %1401 }
0x2205   :  { %v2725_v32 = vmul.f32 %v1402_v1, %v1386_v56 }
0x2207   :  { %v1405_v50 = vpack.c.bf16 %v2725_v32, %v2725_v32 }
0x2209   :  { %1407 = vrot.lane.b32.xlu0 %v1405_v50, %s2297_s18 }
0x227b   :  { %v1408_v2 = vpop.permute.xlu0 %1407 }
0x227c   :  { %2086 = vmatmul.mubr.msk.bf16.vlgmr.msra.gmra.mrb[32].mxu0 %vm251_vm13, %v1408_v2 }
0x227d   :  { %2098 = vmatpush3.bf16.msra.mxu0 %v2589_v34  ;;  %2101 = vmatprep.mubr.msk.bf16.mxu0 %vm2295_vm12, %v2294_v30 }
0x227e   :  { %2099 = vmatprep.subr.bf16.mxu0 %v2294_v30 }
0x2281   :  { %2100 = vmatpush3.bf16.msra.mxu0 %v2596_v3 }
0x234f   :  { %v1446_v4 = vpop.f32.mrb[32].mxu0 }
0x2350   :  { %v1452_v6 = vadd.f32 %v1446_v4, %v1027_v63  ;;  %v2087_v7 = vpop.f32.mrb[33].mxu0 }
0x2351   :  { %v1449_v59 = vpop.f32.mrb[34].mxu0 }
0x2352   :  { %2226 = vtanh.f32 %v1452_v6  ;;  %v2088_v8 = vpop.f32.mrb[35].mxu0  ;;  %v1453_v34 = vmul.f32 0.5, %v1452_v6 }
0x2354   :  { %2228 = vtanh.f32 %v1453_v34 }
0x235c   :  { %v2227_v9 = vpop.eup %2226 }
0x235d   :  { %1460 = vrot.lane.b32.xlu1 %v2227_v9, %s2296_s13 }
0x235e   :  { %v2229_v10 = vpop.eup %2228 }
0x235f   :  { %v1455_v13 = vmul.f32 0.5, %v2229_v10 }
0x2361   :  { %v1456_v14 = vadd.f32 0.5, %v1455_v13 }
0x2363   :  { %v1458_v3 = vmul.f32 %v1456_v14, %v1398_v62 }
0x23cf   :  { %v1461_v30 = vpop.permute.xlu1 %1460 }
0x23d0   :  { %v1463_v15 = vmul.f32 %v1461_v30, %v1456_v14 }
0x23d2   :  { %1465 = vrot.lane.b32.xlu0 %v1463_v15, %s2296_s13 }
0x2444   :  { %v1466_v55 = vpop.permute.xlu0 %1465 }
0x2445   :  { %v1468_v16 = vadd.f32 %v1466_v55, %v1458_v3 }
0x2447   :  { %2230 = vtanh.f32 %v1468_v16 }
0x2451   :  { %v2231_v17 = vpop.eup %2230 }
0x2452   :  { %1471 = vrot.lane.b32.xlu1 %v2231_v17, %s2296_s13 }
0x24c4   :  { %v1472_v18 = vpop.permute.xlu1 %1471 }
0x24c5   :  { %v1474_v21 = vmul.f32 %v1472_v18, %v1456_v14 }
0x24c7   :  { %v1475_v53 = vpack.c.bf16 %v1474_v21, %v1474_v21  ;;  %v1629_v63 = vpack.c.bf16 %v1474_v21, %v2725_v32 }
0x24c9   :  { %1477 = vrot.lane.b32.xlu0 %v1475_v53, %s2297_s18 }
0x253b   :  { %v1478_v22 = vpop.permute.xlu0 %1477 }
0x253c   :  { %2094 = vmatmul.mubr.msk.bf16.vlgmr.msra.gmra.mrb[44].mxu1 %vm251_vm13, %v1478_v22 }
0x253d   :  { %2106 = vmatpush3.bf16.msra.mxu1 %v2146_v61 }
0x253e   :  { %2107 = vmatprep.subr.bf16.mxu1 %v2147_v11 }
0x2541   :  { %2108 = vmatpush3.bf16.msra.mxu1 %v2147_v11 }
0x260f   :  { %v1516_v24 = vpop.f32.mrb[44].mxu1 }
0x2610   :  { %v1522_v25 = vadd.f32 %v1516_v24, %v1032_v57  ;;  %v2095_v26 = vpop.f32.mrb[45].mxu1 }
0x2611   :  { %v1519_v27 = vpop.f32.mrb[46].mxu1 }
0x2612   :  { %2232 = vtanh.f32 %v1522_v25  ;;  %v2096_v29 = vpop.f32.mrb[47].mxu1  ;;  %v1523_v48 = vmul.f32 0.5, %v1522_v25 }
0x2614   :  { %2234 = vtanh.f32 %v1523_v48 }
0x261c   :  { %v2233_v33 = vpop.eup %2232 }
0x261d   :  { %1530 = vrot.lane.b32.xlu1 %v2233_v33, %s2296_s13 }
0x261e   :  { %v2235_v19 = vpop.eup %2234 }
0x261f   :  { %v1525_v42 = vmul.f32 0.5, %v2235_v19 }
0x2621   :  { %v1526_v46 = vadd.f32 0.5, %v1525_v42 }
0x2623   :  { %v1528_v36 = vmul.f32 %v1526_v46, %v1468_v16 }
0x268f   :  { %v1531_v35 = vpop.permute.xlu1 %1530 }
0x2690   :  { %v1533_v23 = vmul.f32 %v1531_v35, %v1526_v46 }
0x2692   :  { %1535 = vrot.lane.b32.xlu0 %v1533_v23, %s2296_s13 }
0x2704   :  { %v1536_v28 = vpop.permute.xlu0 %1535 }
0x2705   :  { %v1538_v37 = vadd.f32 %v1536_v28, %v1528_v36 }
0x2707   :  { %2236 = vtanh.f32 %v1538_v37 }
0x2711   :  { %v2237_v38 = vpop.eup %2236 }
0x2712   :  { %1541 = vrot.lane.b32.xlu1 %v2237_v38, %s2296_s13 }
0x2784   :  { %v1542_v39 = vpop.permute.xlu1 %1541 }
0x2785   :  { %v1544_v41 = vmul.f32 %v1542_v39, %v1526_v46 }
0x2787   :  { %v1545_v43 = vpack.c.bf16 %v1544_v41, %v1544_v41 }
0x2789   :  { %1547 = vrot.lane.b32.xlu0 %v1545_v43, %s2297_s18 }
0x27fb   :  { %v1548_v45 = vpop.permute.xlu0 %1547 }
0x27fc   :  { %2102 = vmatmul.mubr.msk.bf16.vlgmr.msra.gmra.mrb[36].mxu0 %vm251_vm13, %v1548_v45 }
0x28cf   :  { %v1586_v51 = vpop.f32.mrb[36].mxu0 }
0x28d0   :  { %v1592_v52 = vadd.f32 %v1586_v51, %v1035_v49  ;;  %v2103_v56 = vpop.f32.mrb[37].mxu0 }
0x28d1   :  { %v1589_v31 = vpop.f32.mrb[38].mxu0 }
0x28d2   :  { %2238 = vtanh.f32 %v1592_v52  ;;  %v2104_v58 = vpop.f32.mrb[39].mxu0  ;;  %v1593_v54 = vmul.f32 0.5, %v1592_v52 }
0x28d4   :  { %2240 = vtanh.f32 %v1593_v54 }
0x28dc   :  { %v2239_v60 = vpop.eup %2238 }
0x28dd   :  { %1600 = vrot.lane.b32.xlu1 %v2239_v60, %s2296_s13 }
0x28de   :  { %v2241_v62 = vpop.eup %2240 }
0x28df   :  { %v1595_v0 = vmul.f32 0.5, %v2241_v62 }
0x28e1   :  { %v1596_v1 = vadd.f32 0.5, %v1595_v0 }
0x28e3   :  { %v1598_v4 = vmul.f32 %v1596_v1, %v1538_v37 }
0x294f   :  { %v1601_v50 = vpop.permute.xlu1 %1600 }
0x2950   :  { %v1603_v2 = vmul.f32 %v1601_v50, %v1596_v1 }
0x2952   :  { %1605 = vrot.lane.b32.xlu0 %v1603_v2, %s2296_s13 }
0x2956   :  { %1646 = vrot.lane.b32.xlu0 %v1627_v44, %s2297_s18 }
0x295a   :  { %1650 = vrot.lane.b32.xlu0 %v1629_v63, %s2297_s18 }
0x295e   :  { %905 = vrot.lane.b32.xlu0 %v2658_v40, %s2297_s18  ;;  %v1628_v40 = vpack.c.bf16 %v2709_v5, %v2692_v12 }
0x29c4   :  { %v1606_v47 = vpop.permute.xlu0 %1605 }
0x29c5   :  { %v1608_v6 = vadd.f32 %v1606_v47, %v1598_v4 }
0x29c7   :  { %2242 = vtanh.f32 %v1608_v6 }
0x29c8   :  { %v1647_v7 = vpop.permute.xlu0 %1646 }
0x29c9   :  { %2109 = vmatprep.mubr.msk.bf16.mxu1 %vm251_vm13, %v1647_v7 }
0x29cc   :  { %v1651_v32 = vpop.permute.xlu0 %1650 }
0x29d0   :  { %v906_v59 = vpop.permute.xlu0 %905 }
0x29d1   :  { %v2243_v8 = vpop.eup %2242  ;;  %908 = vst.msk [vmem:[#allocation4] sm:$0xff] %vm251_vm13, %v906_v59 }
0x29d2   :  { %1611 = vrot.lane.b32.xlu1 %v2243_v8, %s2296_s13 }
0x29d6   :  { %1648 = vrot.lane.b32.xlu1 %v1628_v40, %s2297_s18 }
0x2a44   :  { %v1612_v9 = vpop.permute.xlu1 %1611 }
0x2a45   :  { %v1614_v34 = vmul.f32 %v1612_v9, %v1596_v1 }
0x2a47   :  { %v1630_v10 = vpack.c.bf16 %v1614_v34, %v1544_v41  ;;  %1616 = vrot.lane.b32.xlu0 %v1614_v34, %s2297_s18 }
0x2a48   :  { %v1649_v13 = vpop.permute.xlu1 %1648 }
0x2a49   :  { %1652 = vrot.lane.b32.xlu1 %v1630_v10, %s2297_s18  ;;  %2110 = vmatmul.mubr.msk.bf16.vlgmr.msra.gmra.mrb[48].mxu1 %vm251_vm13, %v1649_v13 }
0x2a4a   :  { %2113 = vmatprep.mubr.msk.bf16.mxu1 %vm251_vm13, %v1651_v32 }
0x2a4d   :  { %910 = vrot.lane.b32.xlu1 %v2644_v20, %s2298_s5 }
0x2a51   :  { %1622 = vrot.lane.b32.xlu1 %v1608_v6, %s2298_s5 }
0x2ab9   :  { %v1617_v14 = vpop.permute.xlu0 %1616 }
0x2aba   :  { %1620 = vst.msk [vmem:[#allocation4 + $0x8] sm:$0xff] %vm251_vm13, %v1617_v14 }
0x2abb   :  { %v1653_v12 = vpop.permute.xlu1 %1652 }
0x2abc   :  { %2114 = vmatmul.mubr.msk.bf16.gmra.mrb[52].mxu1 %vm251_vm13, %v1653_v12 }
0x2abf   :  { %v911_v5 = vpop.permute.xlu1 %910 }
0x2ac0   :  { %914 = vst.msk [vmem:[#allocation4 + $0x10] sm:$0xff] %vm251_vm13, %v911_v5 }
0x2ac3   :  { %v1623_v30 = vpop.permute.xlu1 %1622 }
0x2ac4   :  { %1626 = vst.msk [vmem:[#allocation4 + $0x18] sm:$0xff] %vm251_vm13, %v1623_v30 }
0x2ac5   :  { %2255 = shalt.err (!%p2252_p4)
}
0x2ac6   :  { %s2256_s15 = scalar_lea.hbm %s2825_s10, 512 }
0x2ac7   :  { %p2257_p5 = scmp.ne.s32.totalorder %s2825_s10, %s2256_s15  ;;  %p2260_p6 = scmp.lt.u32.totalorder %s2256_s15, %s2825_s10 }
0x2ac9   :  { %p2262_p7 = pnand %p2260_p6, %p2257_p5 }
0x2acb   :  { %2265 = shalt.err (!%p2262_p7)
}
0x2acc   :  { %s2300_s20 = smov 128   ;;  %s2301_s0 = smov 8   ;;  %v1844_v20 = vld [vmem:[%s2821_s6] ss:$0 sm:$0xff] }
0x2acd   :  { %1774 = dma.vmem_to_hbm [thread:$0]  %s1769_s11, 512, %s2825_s10, [#allocation5], %s2300_s20, %s2300_s20, %s2301_s0  }
0x2ace   :  { %s2302_s10 = smov [#allocation2]  }
0x2acf   :  { %s1756_s24 = sshll.u32 %s2302_s10, 4  ;;  %s1757_s24 = int_to_ptr.vmem [resolvable:$true] %s1756_s24 }
0x2ad0   :  { %s2266_s6 = scalar_lea.vmem %s1757_s24, 1024  ;;  %p2271_p9 = scmp.lt.s32.totalorder %s1757_s24, %s1757_s24 }
0x2ad1   :  { %p2267_p8 = scmp.ne.s32.totalorder %s1757_s24, %s2266_s6  ;;  %p2272_p10 = scmp.lt.s32.totalorder %s2266_s6, %s2266_s6 }
0x2ad3   :  { %p2273_p11 = por %p2272_p10, %p2271_p9 }
0x2ad5   :  { %p2274_p12 = pnand %p2273_p11, %p2267_p8 }
0x2b1c   :  { %v2111_v15 = vpop.f32.mrb[48].mxu1 }
0x2b1d   :  { %v1721_v3 = vadd.f32 %v2111_v15, %v1844_v20  ;;  %v1712_v55 = vpop.f32.mrb[49].mxu1 }
0x2b1e   :  { %v1713_v16 = vadd.f32 %v1844_v20, %v1712_v55  ;;  %v2112_v17 = vpop.f32.mrb[50].mxu1 }
0x2b1f   :  { %1745 = vst [vmem:[#allocation2 + $0x10] sm:$0xff] %v1721_v3  ;;  %v1724_v18 = vadd.f32 %v2112_v17, %v1844_v20  ;;  %v1715_v21 = vpop.f32.mrb[51].mxu1 }
0x2b20   :  { %1743 = vst [vmem:[#allocation2] sm:$0xff] %v1713_v16  ;;  %v1716_v53 = vadd.f32 %v1844_v20, %v1715_v21 }
0x2b21   :  { %1746 = vst [vmem:[#allocation2 + $0x18] sm:$0xff] %v1724_v18 }
0x2b22   :  { %1744 = vst [vmem:[#allocation2 + $0x8] sm:$0xff] %v1716_v53 }
0x2b8f   :  { %v2115_v22 = vpop.f32.mrb[52].mxu1 }
0x2b90   :  { %v1737_v57 = vadd.f32 %v2115_v22, %v1844_v20  ;;  %v1728_v24 = vpop.f32.mrb[53].mxu1 }
0x2b91   :  { %v1729_v25 = vadd.f32 %v1844_v20, %v1728_v24  ;;  %v2116_v26 = vpop.f32.mrb[54].mxu1 }
0x2b92   :  { %1749 = vst [vmem:[#allocation2 + $0x30] sm:$0xff] %v1737_v57  ;;  %v1740_v27 = vadd.f32 %v2116_v26, %v1844_v20  ;;  %v1731_v29 = vpop.f32.mrb[55].mxu1 }
0x2b93   :  { %1747 = vst [vmem:[#allocation2 + $0x20] sm:$0xff] %v1729_v25  ;;  %v1732_v33 = vadd.f32 %v1844_v20, %v1731_v29 }
0x2b94   :  { %1750 = vst [vmem:[#allocation2 + $0x38] sm:$0xff] %v1740_v27 }
0x2b95   :  { %1748 = vst [vmem:[#allocation2 + $0x28] sm:$0xff] %v1732_v33 }
0x2b96   :  { %2277 = shalt.err (!%p2274_p12)
}
0x2b97   :  { %s2278_s8 = scalar_lea.hbm %s2824_s9, 1024 }
0x2b98   :  { %p2279_p13 = scmp.ne.s32.totalorder %s2824_s9, %s2278_s8  ;;  %p2282_p0 = scmp.lt.u32.totalorder %s2278_s8, %s2824_s9 }
0x2b9a   :  { %p2284_p1 = pnand %p2282_p0, %p2279_p13 }
0x2b9c   :  { %2287 = shalt.err (!%p2284_p1)
}
0x2b9d   :  { %1762 = dma.vmem_to_hbm [thread:$0]  %s1757_s24, 1024, %s2824_s9, [#allocation3], %s2300_s20, %s2300_s20, %s2301_s0  }
0x2b9e   :  { %2288 = dma.done.wait [#allocation3], 1024  }
0x2b9f   :  { %2289 = vsyncadd [#allocation3], 4294966272 }
0x2ba0   :  { %2290 = dma.done.wait [#allocation5], 512  }
0x2ba1   :  { %2291 = vsyncadd [#allocation5], 4294966784 }
0x2ba2   :  { %1781 = vsyncpa [#allocation3], 1 }
0x2ba3   :  { %1782 = vsyncpa [#allocation5], 1 }

</bundles_post_ra>
